<compile_context>
chip_gen: v5e
topology: v5e:2x2
jax: 0.10.0
libtpu: 0.0.40
codegen_flags: <defaults>
</compile_context>

<pallas_src>
import functools
import math

import jax
import jax.numpy as jnp
from jax.experimental import pallas as pl
from jax.experimental.pallas import tpu as pltpu


def _round_up(x, m):
    return ((x + m - 1) // m) * m


# ----------------------------------------------------------------------------
# Fused Pallas kernel: sub-pixel tap gather + matmul + bias
# ----------------------------------------------------------------------------

def _upconv_kernel(x_ref, w_ref, b_ref, o_ref, *, tw, wq, off0):
    """One grid step = (block of N*Hq phase rows) x (one tap row ty).

    x_ref : [1, rh, Wp, Cin]    bf16  rows (qy + ty) of the padded NHWC input
    w_ref : [1, tw, Cin, Cpad]  bf16  packed ConvTranspose weights for tap row ty
    b_ref : [1, Cpad]           f32
    o_ref : [rh*wq, Cpad]       f32   resident across the tap axis (accumulator)
    """
    t = pl.program_id(1)
    rh = x_ref.shape[1]
    cin = x_ref.shape[3]

    acc = jnp.zeros(o_ref.shape, jnp.float32)
    for tx in range(tw):  # tw is small and static -> unrolled
        xs = x_ref[0, :, off0 + tx: off0 + tx + wq, :].reshape(rh * wq, cin)
        acc = acc + jnp.dot(xs, w_ref[0, tx], preferred_element_type=jnp.float32)

    @pl.when(t == 0)
    def _():
        o_ref[...] = acc + b_ref[...]

    @pl.when(t > 0)
    def _():
        o_ref[...] = o_ref[...] + acc


def _pick_rh(nh, wq, wp, cin, cpad, vmem_budget_bytes=12 * 1024 * 1024):
    """Rows of the (N*Hq) phase grid per block, sized to a VMEM byte budget.

    Per row: double-buffered bf16 input band (Wp*Cin) + f32 output band (Wq*Cpad).
    Also keeps rh*wq a multiple of 8 (sublane-aligned output blocks).
    """
    per_row = 2 * (wp * cin * 2 + wq * cpad * 4)
    rh = max(1, vmem_budget_bytes // max(per_row, 1))
    step = 8 // math.gcd(wq, 8)
    rh = max(step, (rh // step) * step)
    rh = min(rh, _round_up(nh, step))
    return rh


# ----------------------------------------------------------------------------
# Sub-pixel (phase) decomposition of ConvTranspose2d
# ----------------------------------------------------------------------------

def _tap_range(k, s, p):
    """Input-offset range d = iy - qy such that ky = ry + p - s*d is a valid
    kernel tap (0 <= ky < k) for some output phase ry in [0, s)."""
    d_max = (s - 1 + p) // s
    d_min = -((k - 1 - p) // s)  # == ceil((p - k + 1) / s)
    return d_min, d_max


def _build_subpixel_weight(w_iohw, b, k, s, p, d_min, tw):
    """Pack the ConvTranspose kernel into one matmul weight.

    W_big[(ty*Tw + tx)*Cin + ci, (ry*s + rx)*Cout + co] = w[ci, co, ky, kx]
    with ky = ry + p - s*(d_min + ty) (zero where ky/kx falls outside the kernel).
    """
    cin, cout = w_iohw.shape[0], w_iohw.shape[1]
    t = jnp.arange(tw)
    r = jnp.arange(s)
    kidx = r[None, :] + p - s * (d_min + t[:, None])          # [Tw, s]
    valid = (kidx >= 0) & (kidx < k)
    kidx = jnp.clip(kidx, 0, k - 1)
    w_hw = jnp.transpose(w_iohw, (2, 3, 0, 1))                # [k, k, Cin, Cout]
    w_sel = w_hw[kidx[:, :, None, None], kidx[None, None, :, :]]   # [Tw,s,Tw,s,Cin,Cout]
    mask = (valid[:, :, None, None] & valid[None, None, :, :]).astype(w_sel.dtype)
    w_sel = w_sel * mask[..., None, None]
    w_big = jnp.transpose(w_sel, (0, 2, 4, 1, 3, 5)).reshape(tw * tw * cin,
                                                             s * s * cout)
    b_big = jnp.tile(b, s * s)                                # [(ry*s+rx)*Cout+co]=b[co]
    return w_big, b_big


def up_conv2d_forward(params, x_nchw, *, kernel_size, padding, strides):
    """UpConv2d.forward: ConvTranspose2d(in, out, kernel_size, padding=padding,
    stride=strides, output_padding=kernel_size - strides) on NCHW input."""
    k, s, p = int(kernel_size), int(strides), int(padding)
    op = k - s
    w, b = params["w"], params["b"]                   # [Cin,Cout,k,k], [Cout]
    n, cin, h, wdt = x_nchw.shape
    cout = w.shape[1]
    ho = (h - 1) * s - 2 * p + k + op
    wo = (wdt - 1) * s - 2 * p + k + op
    hq = -(-ho // s)                                  # phase-grid extents
    wq = -(-wo // s)

    d_min, d_max = _tap_range(k, s, p)
    tw = d_max - d_min + 1                            # taps per spatial dim
    pad_lo = max(0, -d_min)
    off0 = d_min + pad_lo                             # first tap offset in padded coords
    pad_hi_h = max(0, hq - 1 + d_max - (h - 1))
    pad_hi_w = max(0, wq - 1 + d_max - (wdt - 1))

    x = jnp.transpose(x_nchw, (0, 2, 3, 1))           # NCHW -> NHWC
    xp = jnp.pad(x, ((0, 0), (pad_lo, pad_hi_h), (pad_lo, pad_hi_w), (0, 0)))
    wp = xp.shape[2]

    # Tap-ROW shifted copies only: [tw, N*Hq, Wp, Cin] bf16.  The tx gather and
    # the K-dim contraction happen inside the kernel (no tw^2 im2col in HBM).
    xps = jnp.stack(
        [xp[:, off0 + ty: off0 + ty + hq, :, :] for ty in range(tw)], axis=0
    ).astype(jnp.bfloat16).reshape(tw, n * hq, wp, cin)

    # Packed weights / bias; output columns padded to a lane-dense multiple of 128.
    w_big, b_big = _build_subpixel_weight(w, b, k, s, p, d_min, tw)
    cbig = s * s * cout
    cpad = _round_up(cbig, 128)
    if cpad != cbig:
        w_big = jnp.pad(w_big, ((0, 0), (0, cpad - cbig)))
        b_big = jnp.pad(b_big, (0, cpad - cbig))
    w_taps = w_big.reshape(tw, tw, cin, cpad).astype(jnp.bfloat16)
    b_big = b_big.reshape(1, cpad).astype(jnp.float32)

    # M tiling over N*Hq phase rows (full Wq per row); padded cdiv grid.
    nh = n * hq
    rh = _pick_rh(nh, wq, wp, cin, cpad)
    nh_pad = _round_up(nh, rh)
    if nh_pad != nh:
        xps = jnp.pad(xps, ((0, 0), (0, nh_pad - nh), (0, 0), (0, 0)))

    out = pl.pallas_call(
        functools.partial(_upconv_kernel, tw=tw, wq=wq, off0=off0),
        out_shape=jax.ShapeDtypeStruct((nh_pad * wq, cpad), jnp.float32),
        grid=(nh_pad // rh, tw),
        in_specs=[
            pl.BlockSpec((1, rh, wp, cin), lambda i, t: (t, i, 0, 0)),
            pl.BlockSpec((1, tw, cin, cpad), lambda i, t: (t, 0, 0, 0)),
            pl.BlockSpec((1, cpad), lambda i, t: (0, 0)),
        ],
        out_specs=pl.BlockSpec((rh * wq, cpad), lambda i, t: (i, 0)),
        compiler_params=pltpu.CompilerParams(
            dimension_semantics=("parallel", "arbitrary"),
            vmem_limit_bytes=32 * 1024 * 1024,
        ),
    )(xps, w_taps, b_big)

    # Pixel-shuffle + crop + NHWC->NCHW collapsed into one transpose pass.
    # TODO(synk): the final layout pass (and the NCHW->NHWC on input) stay in XLA;
    # fusing them would require an NCHW-native output BlockSpec with lane-sparse stores.
    out = out[: nh * wq, :cbig].reshape(n, hq, wq, s, s, cout)
    out = jnp.transpose(out, (0, 5, 1, 3, 2, 4)).reshape(n, cout, hq * s, wq * s)
    return out[:, :, :ho, :wo]


# ----------------------------------------------------------------------------
# f32 reference (fractionally-strided conv) for in-script verification
# ----------------------------------------------------------------------------

def _conv_transpose_ref(x_nchw, w_iohw, b, k, s, p, op):
    w_conv = jnp.transpose(jnp.flip(w_iohw, axis=(2, 3)), (1, 0, 2, 3))  # OIHW
    pad = (k - 1 - p, k - 1 - p + op)
    y = jax.lax.conv_general_dilated(
        x_nchw, w_conv, window_strides=(1, 1), padding=(pad, pad),
        lhs_dilation=(s, s), dimension_numbers=("NCHW", "OIHW", "NCHW"),
        precision=jax.lax.Precision.HIGHEST)
    return y + b.reshape(1, -1, 1, 1)


# ----------------------------------------------------------------------------

if __name__ == "__main__":
    in_channel, out_channel = 32, 16
    kernel_size, padding, strides = 3, 1, 2        # output_padding = k - s = 1
    batch, height, width = 2, 16, 16

    key = jax.random.PRNGKey(0)
    kw, kb, kx = jax.random.split(key, 3)
    bound = 1.0 / float(out_channel * kernel_size * kernel_size) ** 0.5
    params = {
        "w": jax.random.uniform(kw, (in_channel, out_channel, kernel_size, kernel_size),
                                jnp.float32, -bound, bound),
        "b": jax.random.uniform(kb, (out_channel,), jnp.float32, -bound, bound),
    }
    x = jax.random.normal(kx, (batch, in_channel, height, width), jnp.float32)

    fwd = jax.jit(functools.partial(up_conv2d_forward, kernel_size=kernel_size,
                                    padding=padding, strides=strides))
    y = fwd(params, x)
    jax.block_until_ready(y)

    out_h = (height - 1) * strides - 2 * padding + kernel_size + (kernel_size - strides)
    out_w = (width - 1) * strides - 2 * padding + kernel_size + (kernel_size - strides)
    assert y.shape == (batch, out_channel, out_h, out_w), y.shape
    assert bool(jnp.all(jnp.isfinite(y)))

    y_ref = _conv_transpose_ref(x, params["w"], params["b"], kernel_size, strides,
                                padding, kernel_size - strides)
    max_err = float(jnp.max(jnp.abs(y - y_ref)))
    assert max_err < 1e-1, max_err                 # bf16-operand tolerance
    print("KERNEL_OK")
</pallas_src>

<mosaic_0001>
module attributes {stable_mosaic.version = 11 : i64} {
  func.func @_upconv_kernel(%arg0: i32, %arg1: i32, %arg2: memref<1x32x17x32xbf16, #tpu.memory_space<vmem>>, %arg3: memref<1x2x32x128xbf16, #tpu.memory_space<vmem>>, %arg4: memref<1x128xf32, #tpu.memory_space<vmem>>, %arg5: memref<512x128xf32, #tpu.memory_space<vmem>>) attributes {dimension_semantics = [#tpu.dimension_semantics<parallel>, #tpu.dimension_semantics<arbitrary>], iteration_bounds = array<i64: 1, 2>, scalar_prefetch = 0 : i64, scratch_operands = 0 : i64, tpu.core_type = #tpu.core_type<tc>, window_params = [{transform_indices = @transform_0, window_bounds = array<i64: 1, 32, 17, 32>}, {transform_indices = @transform_1, window_bounds = array<i64: 1, 2, 32, 128>}, {pipeline_mode = #tpu.pipeline_mode<synchronous>, transform_indices = @transform_2, window_bounds = array<i64: 1, 128>}, {transform_indices = @transform_3, window_bounds = array<i64: 512, 128>}]} {
    %cst = arith.constant 0.000000e+00 : f32
    %0 = vector.broadcast %cst : f32 to vector<512x128xf32>
    %c0 = arith.constant 0 : index
    %c0_0 = arith.constant 0 : index
    %c0_1 = arith.constant 0 : index
    %c0_2 = arith.constant 0 : index
    %1 = vector.load %arg2[%c0, %c0_0, %c0_1, %c0_2] : memref<1x32x17x32xbf16, #tpu.memory_space<vmem>>, vector<1x32x16x32xbf16>
    %2 = vector.shape_cast %1 : vector<1x32x16x32xbf16> to vector<32x16x32xbf16>
    %3 = vector.shape_cast %2 : vector<32x16x32xbf16> to vector<512x32xbf16>
    %c0_3 = arith.constant 0 : index
    %c0_4 = arith.constant 0 : index
    %c0_5 = arith.constant 0 : index
    %c0_6 = arith.constant 0 : index
    %4 = vector.load %arg3[%c0_3, %c0_4, %c0_5, %c0_6] : memref<1x2x32x128xbf16, #tpu.memory_space<vmem>>, vector<1x1x32x128xbf16>
    %5 = vector.shape_cast %4 : vector<1x1x32x128xbf16> to vector<32x128xbf16>
    %cst_7 = arith.constant dense<0.000000e+00> : vector<512x128xf32>
    %6 = tpu.matmul %3, %5, %cst_7 {dimension_numbers = #tpu.dot_dimension_numbers<[1], [0], [0], [1], [0, 0, 1, 1], [], []>} : vector<512x32xbf16>, vector<32x128xbf16>, vector<512x128xf32> -> vector<512x128xf32>
    %7 = arith.addf %0, %6 : vector<512x128xf32>
    %c0_8 = arith.constant 0 : index
    %c0_9 = arith.constant 0 : index
    %c1 = arith.constant 1 : index
    %c0_10 = arith.constant 0 : index
    %8 = vector.load %arg2[%c0_8, %c0_9, %c1, %c0_10] : memref<1x32x17x32xbf16, #tpu.memory_space<vmem>>, vector<1x32x16x32xbf16>
    %9 = vector.shape_cast %8 : vector<1x32x16x32xbf16> to vector<32x16x32xbf16>
    %10 = vector.shape_cast %9 : vector<32x16x32xbf16> to vector<512x32xbf16>
    %c0_11 = arith.constant 0 : index
    %c1_12 = arith.constant 1 : index
    %c0_13 = arith.constant 0 : index
    %c0_14 = arith.constant 0 : index
    %11 = vector.load %arg3[%c0_11, %c1_12, %c0_13, %c0_14] : memref<1x2x32x128xbf16, #tpu.memory_space<vmem>>, vector<1x1x32x128xbf16>
    %12 = vector.shape_cast %11 : vector<1x1x32x128xbf16> to vector<32x128xbf16>
    %cst_15 = arith.constant dense<0.000000e+00> : vector<512x128xf32>
    %13 = tpu.matmul %10, %12, %cst_15 {dimension_numbers = #tpu.dot_dimension_numbers<[1], [0], [0], [1], [0, 0, 1, 1], [], []>} : vector<512x32xbf16>, vector<32x128xbf16>, vector<512x128xf32> -> vector<512x128xf32>
    %14 = arith.addf %7, %13 : vector<512x128xf32>
    %c0_i32 = arith.constant 0 : i32
    %15 = arith.cmpi eq, %arg1, %c0_i32 : i32
    %16 = arith.extui %15 : i1 to i32
    %c0_i32_16 = arith.constant 0 : i32
    %17 = arith.cmpi ne, %16, %c0_i32_16 : i32
    scf.if %17 {
      %c0_19 = arith.constant 0 : index
      %c0_20 = arith.constant 0 : index
      %21 = vector.load %arg4[%c0_19, %c0_20] : memref<1x128xf32, #tpu.memory_space<vmem>>, vector<1x128xf32>
      %22 = vector.broadcast %21 : vector<1x128xf32> to vector<512x128xf32>
      %23 = arith.addf %14, %22 : vector<512x128xf32>
      %c0_21 = arith.constant 0 : index
      %c0_22 = arith.constant 0 : index
      %24 = vector.load %arg5[%c0_21, %c0_22] : memref<512x128xf32, #tpu.memory_space<vmem>>, vector<512x128xf32>
      tpu.vector_store %arg5[%c0_21, %c0_22], %23 {strides = array<i32>} : memref<512x128xf32, #tpu.memory_space<vmem>>, vector<512x128xf32>,
    } else {
    }
    %c0_i32_17 = arith.constant 0 : i32
    %18 = arith.cmpi sgt, %arg1, %c0_i32_17 : i32
    %19 = arith.extui %18 : i1 to i32
    %c0_i32_18 = arith.constant 0 : i32
    %20 = arith.cmpi ne, %19, %c0_i32_18 : i32
    scf.if %20 {
      %c0_19 = arith.constant 0 : index
      %c0_20 = arith.constant 0 : index
      %21 = vector.load %arg5[%c0_19, %c0_20] : memref<512x128xf32, #tpu.memory_space<vmem>>, vector<512x128xf32>
      %22 = arith.addf %21, %14 : vector<512x128xf32>
      %c0_21 = arith.constant 0 : index
      %c0_22 = arith.constant 0 : index
      %23 = vector.load %arg5[%c0_21, %c0_22] : memref<512x128xf32, #tpu.memory_space<vmem>>, vector<512x128xf32>
      tpu.vector_store %arg5[%c0_21, %c0_22], %22 {strides = array<i32>} : memref<512x128xf32, #tpu.memory_space<vmem>>, vector<512x128xf32>,
    } else {
    }
    return
  }
  func.func @transform_0(%arg0: i32, %arg1: i32) -> (i32, i32, i32, i32) {
    %c0_i32 = arith.constant 0 : i32
    %c0_i32_0 = arith.constant 0 : i32
    %c0_i32_1 = arith.constant 0 : i32
    return %arg1, %arg0, %c0_i32, %c0_i32_0 : i32, i32, i32, i32
  }
  func.func @transform_1(%arg0: i32, %arg1: i32) -> (i32, i32, i32, i32) {
    %c0_i32 = arith.constant 0 : i32
    %c0_i32_0 = arith.constant 0 : i32
    %c0_i32_1 = arith.constant 0 : i32
    %c0_i32_2 = arith.constant 0 : i32
    return %arg1, %c0_i32, %c0_i32_0, %c0_i32_1 : i32, i32, i32, i32
  }
  func.func @transform_2(%arg0: i32, %arg1: i32) -> (i32, i32) {
    %c0_i32 = arith.constant 0 : i32
    %c0_i32_0 = arith.constant 0 : i32
    %c0_i32_1 = arith.constant 0 : i32
    return %c0_i32, %c0_i32_0 : i32, i32
  }
  func.func @transform_3(%arg0: i32, %arg1: i32) -> (i32, i32) {
    %c0_i32 = arith.constant 0 : i32
    %c0_i32_0 = arith.constant 0 : i32
    return %arg0, %c0_i32 : i32, i32
  }
}

</mosaic_0001>

<bundles_post_ra>
// kernel: tile.8
= control target key start
LH: loop header
LB: loop body
LE: loop exit
PB: predicated region body
PF: predicated region fallthrough
CT: control target
= control target key end

     0   :  { %s22_s0 = inlined_call_operand.vmem [shape: f32[16], index: 0, kind: input, shape index: {}]   ;;  %s23_s1 = inlined_call_operand.vmem [shape: f32[4,16], index: 1, kind: output, shape index: {}]  }
   0x1   :  { %v4_v0 = vld [vmem:[%s22_s0] ss:$0 sm:$0xff] }
   0x2   :  { %5 = vst [vmem:[%s23_s1] sm:$0xf] %v4_v0 }

// kernel: tile.9
= control target key start
LH: loop header
LB: loop body
LE: loop exit
PB: predicated region body
PF: predicated region fallthrough
CT: control target
= control target key end

     0   :  { %s37_s8 = smov 16   ;;  %s38_s9 = smov 32   ;;  %vm7_vm0 = vcmask 130048   ;;  %vm13_vm1 = vcmask 523648   ;;  %vm19_vm2 = vcmask 392448   ;;  %vm25_vm3 = vcmask 261248   ;;  %s55_s0 = inlined_call_operand.vmem [shape: f32[4,16], index: 0, kind: input, shape index: {}]   ;;  %s56_s1 = inlined_call_operand.vmem [shape: f32[64], index: 1, kind: output, shape index: {}]  }
   0x1   :  { %v4_v0 = vld [vmem:[%s55_s0] sm:$0xf]  ;;  %s36_s0 = smov 48  }
   0x2   :  { %5 = vst [vmem:[#allocation1] sm:$0xf] %v4_v0 }
   0x9   :  { %v10_v1 = vld [vmem:[#allocation1 + $0x3] sm:$0x1]   ;;  %v22_v2 = vld [vmem:[#allocation1 + $0x1] sm:$0x1]   ;;  %v16_v3 = vld [vmem:[#allocation1 + $0x2] sm:$0x1]  }
   0xa   :  { %11 = vrot.lane.b32.xlu0 %v10_v1, %s36_s0  ;;  %23 = vrot.lane.b32.xlu1 %v22_v2, %s37_s8  ;;  %v6_v4 = vld [vmem:[#allocation1] sm:$0x1]  }
   0xb   :  { %8 = vst.msk [vmem:[#allocation0] sm:$0x1] %vm7_vm0, %v6_v4  }
  0x12   :  { %17 = vrot.lane.b32.xlu0 %v16_v3, %s38_s9 }
  0x7c   :  { %v12_v5 = vpop.permute.xlu0 %11   ;;  %v24_v6 = vpop.permute.xlu1 %23  }
  0x7d   :  { %14 = vst.msk [vmem:[#allocation0] sm:$0x1] %vm13_vm1, %v12_v5  }
  0x84   :  { %v18_v7 = vpop.permute.xlu0 %17  }
  0x85   :  { %20 = vst.msk [vmem:[#allocation0] sm:$0x1] %vm19_vm2, %v18_v7  }
  0x86   :  { %26 = vst.msk [vmem:[#allocation0] sm:$0x1] %vm25_vm3, %v24_v6  }
  0x8d   :  { %v29_v8 = vld [vmem:[#allocation0] sm:$0x1] }
  0x8e   :  { %32 = vst [vmem:[%s56_s1] sm:$0x1] %v29_v8 }

// kernel: up_conv2d_forward.1
= control target key start
LH: loop header
LB: loop body
LE: loop exit
PB: predicated region body
PF: predicated region fallthrough
CT: control target
= control target key end

     0   :  { %s2662_s12 = smov 0   ;;  %s2664_s13 = smov 0   ;;  %s3930_s0 = inlined_call_operand.vmem [shape: bf16[2,32,17,32], index: 0, kind: input, shape index: {}]   ;;  %s3931_s1 = inlined_call_operand.vmem [shape: bf16[2,2,32,128], index: 1, kind: input, shape index: {}]   ;;  %s3932_s2 = inlined_call_operand.vmem [shape: f32[1,128], index: 2, kind: input, shape index: {}]   ;;  %s3933_s3 = inlined_call_operand.vmem [shape: f32[512,128], index: 3, kind: output, shape index: {}]  }
   0x1   :  { %s2666_s14 = smov 0  }
   0x2 LB: > { %s22_s15 = sadd.s32 1, %s2636_s13  ;;  %p2329_p0 = scmp.ge.s32.totalorder %s2640_s14, 1  ;;  %s2640_s14 = sphi %s2666_s14, %s13_s14   ;;  %s2636_s13 = sphi %s2664_s13, %s3970_s13   ;;  %s2632_s12 = sphi %s2662_s12, %s3969_s12  }
   0x3   : > { %p23_p1 = scmp.ge.s32.totalorder %s22_s15, 2  ;;  %p167_p2 = scmp.lt.s32.totalorder %s2640_s14, 3 }
   0x5   : > { %s3972_s15 = smov (%p23_p1, %s22_s15), 0  ;;  %p168_p3 = pnand %p2329_p0, %p167_p2 }
   0x7   : > { %171 = sbr.rel (%p168_p3) target bundleno = 559 (0x22f), region = 32 }
   0xc   : > { %p202_p4 = scmp.lt.s32.totalorder %s2632_s12, 1  ;;  %vm1208_vm0 = vcmask 261120   ;;  %vm324_vm1 = vsmask.f32 3328  ;;  %vm325_vm2 = vsmask.f32 7440 }
   0xd   : > { %vm2704_vm3 = vmor %vm324_vm1, %vm325_vm2  ;;  %p2545_p5 = scmp.ne.s32.totalorder %s2632_s12, 0 }
   0xe   : > { %s203_s16 = scalar_select %p202_p4, %s2632_s12, 1 }
  0x10   : > { %s2592_s17 = smul.u32 384, %s203_s16  ;;  %s2551_s18 = sshll.u32 %s203_s16, 5 }
  0x11   : > { %s216_s21 = scalar_lea.vmem %s3931_s1, %s2551_s18 }
  0x12   : > { %s2690_s24 = scalar_lea.vmem %s3930_s0, %s2592_s17  ;;  %v2585_v0 = vld [vmem:[%s216_s21 + $0x8] sm:$0xff]  ;;  %v2587_v1 = vld [vmem:[%s216_s21 + $0x18] sm:$0xff]  ;;  %v2584_v2 = vld [vmem:[%s216_s21] sm:$0xff] }
  0x13   : > { %v2586_v3 = vld [vmem:[%s216_s21 + $0x10] sm:$0xff]  ;;  %2590 = vmatpush.bf16.msra.mxu3 %v2585_v0  ;;  %1748 = vmatpush.bf16.msra.mxu1 %v2585_v0  ;;  %v224_v4 = vld [vmem:[%s2690_s24] sm:$0xf]  ;;  %v225_v5 = vld [vmem:[%s2690_s24 + $0x4] sm:$0xf] }
  0x14   : > { %v292_v6 = vld [vmem:[%s2690_s24 + $0x8] sm:$0x1]  ;;  %1311 = vmatpush.bf16.msra.mxu0 %v2587_v1  ;;  %2588 = vmatpush.bf16.msra.mxu2 %v2587_v1  ;;  %v328_v7 = vshrl.u32 %v224_v4, 16  ;;  %v331_v8 = vshll.u32 %v224_v4, 16  ;;  %v337_v9 = vshll.u32 %v225_v5, 16  ;;  %v341_v10 = vshrl.u32 %v225_v5, 16 }
  0x15   : > { %v256_v11 = vld [vmem:[%s2690_s24 + $0xc0] sm:$0xf]  ;;  %v347_v12 = vshll.u32 %v292_v6, 16  ;;  %v257_v13 = vld [vmem:[%s2690_s24 + $0xc4] sm:$0xf] }
  0x16   : > { %v308_v14 = vld [vmem:[%s2690_s24 + $0xc8] sm:$0x1]  ;;  %v712_v15 = vshrl.u32 %v256_v11, 16  ;;  %v2568_v16 = vld [vmem:[%s2690_s24 + $0xc0] sm:$0xff]  ;;  %v330_v18 = vrot.slane %v328_v7, 4  ;;  %v333_v19 = vrot.slane %v331_v8, 5 }
  0x17   : > { %v2552_v17 = vld [vmem:[%s2690_s24] sm:$0xff]  ;;  %v339_v20 = vrot.slane %v337_v9, 5  ;;  %v343_v21 = vrot.slane %v341_v10, 4  ;;  %2591 = vmatpush.bf16.msra.mxu3 %v2584_v2  ;;  %1749 = vmatpush.bf16.msra.mxu1 %v2584_v2  ;;  %v349_v22 = vrot.slane %v347_v12, 5  ;;  %v715_v24 = vshll.u32 %v256_v11, 16 }
  0x18   : > { %v714_v23 = vrot.slane %v712_v15, 4  ;;  %v721_v25 = vshll.u32 %v257_v13, 16  ;;  %v226_v26 = vld [vmem:[%s2690_s24 + $0xc] sm:$0xf]  ;;  %1312 = vmatpush.bf16.msra.mxu0 %v2586_v3  ;;  %2589 = vmatpush.bf16.msra.mxu2 %v2586_v3  ;;  %v334_v27 = vor.u32 %v333_v19, %v330_v18  ;;  %v725_v29 = vshrl.u32 %v257_v13, 16 }
  0x19   : > { %v344_v28 = vor.u32 %v343_v21, %v339_v20  ;;  %v731_v30 = vshll.u32 %v308_v14, 16  ;;  %v227_v31 = vld [vmem:[%s2690_s24 + $0x10] sm:$0xf]  ;;  %v717_v33 = vrot.slane %v715_v24, 5  ;;  %v352_v35 = vshrl.u32 %v226_v26, 16 }
  0x1a   : > { %v723_v34 = vrot.slane %v721_v25, 5  ;;  %v355_v36 = vshll.u32 %v226_v26, 16  ;;  %2529 = vmatmul.msk.bf16.vlgmr.msra.gmra.mxu3 %vm1208_vm0, %v2568_v16  ;;  %2513 = vmatmul.msk.bf16.vlgmr.msra.gmra.mxu1 %vm1208_vm0, %v2552_v17  ;;  %v335_v37 = vrot.slane %v334_v27, 4  ;;  %v727_v39 = vrot.slane %v725_v29, 4  ;;  %v293_v42 = vld [vmem:[%s2690_s24 + $0x14] sm:$0x1] }
  0x1b   : > { %v345_v38 = vrot.slane %v344_v28, 4  ;;  %v733_v40 = vrot.slane %v731_v30, 5  ;;  %v718_v41 = vor.u32 %v717_v33, %v714_v23  ;;  %v354_v43 = vrot.slane %v352_v35, 4  ;;  %v258_v50 = vld [vmem:[%s2690_s24 + $0xcc] sm:$0xf] }
  0x1c   : > { %v357_v44 = vrot.slane %v355_v36, 5  ;;  %v361_v45 = vshll.u32 %v227_v31, 16  ;;  %v340_v46 = vsel %vm2704_vm3, %v335_v37, %v339_v20  ;;  %v728_v48 = vor.u32 %v727_v39, %v723_v34  ;;  %v259_v61 = vld [vmem:[%s2690_s24 + $0xd0] sm:$0xf]  ;;  %v309_v3 = vld [vmem:[%s2690_s24 + $0xd4] sm:$0x1] }
  0x1d   : > { %v350_v47 = vsel %vm2704_vm3, %v345_v38, %v349_v22  ;;  %v365_v49 = vshrl.u32 %v227_v31, 16  ;;  %v1100_v51 = vunpack.c.l.b16 %v340_v46  ;;  %v719_v53 = vrot.slane %v718_v41, 4  ;;  %v228_v11 = vld [vmem:[%s2690_s24 + $0x18] sm:$0xf]  ;;  %v229_v15 = vld [vmem:[%s2690_s24 + $0x1c] sm:$0xf] }
  0x1e   : > { %v1101_v52 = vunpack.c.l.b16 %v350_v47  ;;  %v358_v54 = vor.u32 %v357_v44, %v354_v43  ;;  %v729_v55 = vrot.slane %v728_v48, 4  ;;  %v363_v56 = vrot.slane %v361_v45, 5  ;;  %v2569_v23 = vld [vmem:[%s2690_s24 + $0xcc] sm:$0xff]  ;;  %v260_v30 = vld [vmem:[%s2690_s24 + $0xd8] sm:$0xf] }
  0x1f   : > { %v367_v57 = vrot.slane %v365_v49, 4  ;;  %v371_v58 = vshll.u32 %v293_v42, 16  ;;  %v724_v60 = vsel %vm2704_vm3, %v719_v53, %v723_v34  ;;  %v736_v62 = vshrl.u32 %v258_v50, 16  ;;  %v2553_v24 = vld [vmem:[%s2690_s24 + $0xc] sm:$0xff]  ;;  %v261_v35 = vld [vmem:[%s2690_s24 + $0xdc] sm:$0xf] }
  0x20   : > { %v1164_v59 = vpack.c.b16 %v1101_v52, %v1100_v51  ;;  %v734_v63 = vsel %vm2704_vm3, %v729_v55, %v733_v40  ;;  %v1132_v0 = vunpack.c.l.b16 %v724_v60  ;;  %v359_v1 = vrot.slane %v358_v54, 4  ;;  %v294_v36 = vld [vmem:[%s2690_s24 + $0x20] sm:$0x1]  ;;  %v231_v60 = vld [vmem:[%s2690_s24 + $0x28] sm:$0xf] }
  0x21   : > { %v368_v2 = vor.u32 %v367_v57, %v363_v56  ;;  %v1133_v4 = vunpack.c.l.b16 %v734_v63  ;;  %v373_v5 = vrot.slane %v371_v58, 5  ;;  %v738_v6 = vrot.slane %v736_v62, 4  ;;  %v310_v53 = vld [vmem:[%s2690_s24 + $0xe0] sm:$0x1]  ;;  %v230_v58 = vld [vmem:[%s2690_s24 + $0x24] sm:$0xf] }
  0x22   : > { %2345 = vmatmul.msk.bf16.vlgmr.msra.gmra.mxu0 %vm1208_vm0, %v1164_v59  ;;  %v739_v7 = vshll.u32 %v258_v50, 16  ;;  %v745_v9 = vshll.u32 %v259_v61, 16  ;;  %v749_v10 = vshrl.u32 %v259_v61, 16  ;;  %v755_v14 = vshll.u32 %v309_v3, 16 }
  0x23   : > { %v369_v8 = vrot.slane %v368_v2, 4  ;;  %v1180_v12 = vpack.c.b16 %v1133_v4, %v1132_v0  ;;  %v364_v16 = vsel %vm2704_vm3, %v359_v1, %v363_v56  ;;  %v376_v21 = vshrl.u32 %v228_v11, 16 }
  0x24   : > { %v741_v13 = vrot.slane %v739_v7, 5  ;;  %v747_v17 = vrot.slane %v745_v9, 5  ;;  %v751_v18 = vrot.slane %v749_v10, 4  ;;  %v379_v22 = vshll.u32 %v228_v11, 16  ;;  %v262_v7 = vld [vmem:[%s2690_s24 + $0xe4] sm:$0xf] }
  0x25   : > { %2361 = vmatmul.msk.bf16.vlgmr.msra.gmra.mxu2 %vm1208_vm0, %v1180_v12  ;;  %v374_v19 = vsel %vm2704_vm3, %v369_v8, %v373_v5  ;;  %v757_v26 = vrot.slane %v755_v14, 5  ;;  %v385_v27 = vshll.u32 %v229_v15, 16  ;;  %v389_v28 = vshrl.u32 %v229_v15, 16  ;;  %v263_v11 = vld [vmem:[%s2690_s24 + $0xe8] sm:$0xf]  ;;  %v2570_v12 = vld [vmem:[%s2690_s24 + $0xd8] sm:$0xff] }
  0x26   : > { %v742_v20 = vor.u32 %v741_v13, %v738_v6  ;;  %v752_v25 = vor.u32 %v751_v18, %v747_v17  ;;  %v1102_v31 = vunpack.c.l.b16 %v364_v16  ;;  %v1103_v33 = vunpack.c.l.b16 %v374_v19  ;;  %v2554_v13 = vld [vmem:[%s2690_s24 + $0x18] sm:$0xff]  ;;  %v295_v18 = vld [vmem:[%s2690_s24 + $0x2c] sm:$0x1] }
  0x27   : > { %v378_v37 = vrot.slane %v376_v21, 4  ;;  %v381_v38 = vrot.slane %v379_v22, 5  ;;  %v387_v39 = vrot.slane %v385_v27, 5  ;;  %v391_v40 = vrot.slane %v389_v28, 4 }
  0x28   : > { %v743_v29 = vrot.slane %v742_v20, 4  ;;  %v753_v34 = vrot.slane %v752_v25, 4  ;;  %v760_v43 = vshrl.u32 %v260_v30, 16  ;;  %v763_v44 = vshll.u32 %v260_v30, 16 }
  0x29   : > { %v769_v45 = vshll.u32 %v261_v35, 16  ;;  %v773_v46 = vshrl.u32 %v261_v35, 16  ;;  %v1165_v47 = vpack.c.b16 %v1103_v33, %v1102_v31  ;;  %v395_v48 = vshll.u32 %v294_v36, 16  ;;  %v311_v33 = vld [vmem:[%s2690_s24 + $0xec] sm:$0x1] }
  0x2a   : > { %2530 = vmatmul.msk.bf16.gmra.mxu3 %vm1208_vm0, %v2569_v23  ;;  %2514 = vmatmul.msk.bf16.gmra.mxu1 %vm1208_vm0, %v2553_v24  ;;  %v748_v41 = vsel %vm2704_vm3, %v743_v29, %v747_v17  ;;  %v758_v42 = vsel %vm2704_vm3, %v753_v34, %v757_v26  ;;  %v382_v51 = vor.u32 %v381_v38, %v378_v37  ;;  %v762_v54 = vrot.slane %v760_v43, 4 }
  0x2b   : > { %v1134_v49 = vunpack.c.l.b16 %v748_v41  ;;  %v1135_v50 = vunpack.c.l.b16 %v758_v42  ;;  %v392_v52 = vor.u32 %v391_v40, %v387_v39  ;;  %v765_v55 = vrot.slane %v763_v44, 5 }
  0x2c   : > { %v771_v56 = vrot.slane %v769_v45, 5  ;;  %v775_v57 = vrot.slane %v773_v46, 4  ;;  %v397_v59 = vrot.slane %v395_v48, 5  ;;  %v383_v62 = vrot.slane %v382_v51, 4 }
  0x2d   : > { %v1181_v61 = vpack.c.b16 %v1135_v50, %v1134_v49  ;;  %v393_v63 = vrot.slane %v392_v52, 4  ;;  %v779_v0 = vshll.u32 %v310_v53, 16  ;;  %v766_v1 = vor.u32 %v765_v55, %v762_v54  ;;  %v233_v49 = vld [vmem:[%s2690_s24 + $0x34] sm:$0xf] }
  0x2e   : > { %v776_v2 = vor.u32 %v775_v57, %v771_v56  ;;  %v400_v3 = vshrl.u32 %v230_v58, 16  ;;  %v403_v4 = vshll.u32 %v230_v58, 16  ;;  %v409_v5 = vshll.u32 %v231_v60, 16 }
  0x2f   : > { %v413_v6 = vshrl.u32 %v231_v60, 16  ;;  %v388_v8 = vsel %vm2704_vm3, %v383_v62, %v387_v39  ;;  %v398_v9 = vsel %vm2704_vm3, %v393_v63, %v397_v59  ;;  %v781_v10 = vrot.slane %v779_v0, 5  ;;  %v2571_v59 = vld [vmem:[%s2690_s24 + $0xe4] sm:$0xff]  ;;  %v265_v62 = vld [vmem:[%s2690_s24 + $0xf4] sm:$0xf] }
  0x30   : > { %v767_v14 = vrot.slane %v766_v1, 4  ;;  %v777_v15 = vrot.slane %v776_v2, 4  ;;  %v402_v16 = vrot.slane %v400_v3, 4  ;;  %v784_v17 = vshrl.u32 %v262_v7, 16  ;;  %v2555_v60 = vld [vmem:[%s2690_s24 + $0x24] sm:$0xff] }
  0x31   : > { %v405_v19 = vrot.slane %v403_v4, 5  ;;  %v411_v20 = vrot.slane %v409_v5, 5  ;;  %v415_v21 = vrot.slane %v413_v6, 4  ;;  %v787_v22 = vshll.u32 %v262_v7, 16  ;;  %v296_v7 = vld [vmem:[%s2690_s24 + $0x38] sm:$0x1] }
  0x32   : > { %2346 = vmatmul.msk.bf16.gmra.mxu0 %vm1208_vm0, %v1165_v47  ;;  %v793_v23 = vshll.u32 %v263_v11, 16  ;;  %v797_v24 = vshrl.u32 %v263_v11, 16  ;;  %v1104_v25 = vunpack.c.l.b16 %v388_v8  ;;  %v1105_v26 = vunpack.c.l.b16 %v398_v9  ;;  %v232_v47 = vld [vmem:[%s2690_s24 + $0x30] sm:$0xf] }
  0x33   : > { %v772_v27 = vsel %vm2704_vm3, %v767_v14, %v771_v56  ;;  %v782_v28 = vsel %vm2704_vm3, %v777_v15, %v781_v10  ;;  %v419_v29 = vshll.u32 %v295_v18, 16  ;;  %v406_v30 = vor.u32 %v405_v19, %v402_v16 }
  0x34   : > { %v416_v31 = vor.u32 %v415_v21, %v411_v20  ;;  %v786_v34 = vrot.slane %v784_v17, 4  ;;  %v789_v35 = vrot.slane %v787_v22, 5  ;;  %v795_v36 = vrot.slane %v793_v23, 5  ;;  %v312_v22 = vld [vmem:[%s2690_s24 + $0xf8] sm:$0x1] }
  0x35   : > { %2362 = vmatmul.msk.bf16.gmra.mxu2 %vm1208_vm0, %v1181_v61  ;;  %v799_v37 = vrot.slane %v797_v24, 4  ;;  %v1166_v38 = vpack.c.b16 %v1105_v26, %v1104_v25  ;;  %v1136_v39 = vunpack.c.l.b16 %v772_v27  ;;  %v1137_v40 = vunpack.c.l.b16 %v782_v28  ;;  %v264_v61 = vld [vmem:[%s2690_s24 + $0xf0] sm:$0xf] }
  0x36   : > { %v803_v41 = vshll.u32 %v311_v33, 16  ;;  %v407_v42 = vrot.slane %v406_v30, 4  ;;  %v417_v43 = vrot.slane %v416_v31, 4  ;;  %v421_v44 = vrot.slane %v419_v29, 5  ;;  %v234_v30 = vld [vmem:[%s2690_s24 + $0x3c] sm:$0xf] }
  0x37   : > { %v790_v45 = vor.u32 %v789_v35, %v786_v34  ;;  %v800_v46 = vor.u32 %v799_v37, %v795_v36  ;;  %v1182_v48 = vpack.c.b16 %v1137_v40, %v1136_v39  ;;  %v424_v54 = vshrl.u32 %v232_v47, 16  ;;  %v235_v31 = vld [vmem:[%s2690_s24 + $0x40] sm:$0xf]  ;;  %v2572_v40 = vld [vmem:[%s2690_s24 + $0xf0] sm:$0xff] }
  0x38   : > { %v805_v50 = vrot.slane %v803_v41, 5  ;;  %v412_v51 = vsel %vm2704_vm3, %v407_v42, %v411_v20  ;;  %v422_v52 = vsel %vm2704_vm3, %v417_v43, %v421_v44  ;;  %v427_v56 = vshll.u32 %v232_v47, 16  ;;  %v2556_v41 = vld [vmem:[%s2690_s24 + $0x30] sm:$0xff]  ;;  %v266_v44 = vld [vmem:[%s2690_s24 + $0xfc] sm:$0xf] }
  0x39   : > { %v791_v53 = vrot.slane %v790_v45, 4  ;;  %v801_v55 = vrot.slane %v800_v46, 4  ;;  %v433_v57 = vshll.u32 %v233_v49, 16  ;;  %v437_v58 = vshrl.u32 %v233_v49, 16  ;;  %v267_v45 = vld [vmem:[%s2690_s24 + $0x100] sm:$0xf] }
  0x3a   : > { %2531 = vmatmul.msk.bf16.gmra.mxu3 %vm1208_vm0, %v2570_v12  ;;  %2515 = vmatmul.msk.bf16.gmra.mxu1 %vm1208_vm0, %v2554_v13  ;;  %v1106_v63 = vunpack.c.l.b16 %v412_v51  ;;  %v1107_v0 = vunpack.c.l.b16 %v422_v52  ;;  %v426_v2 = vrot.slane %v424_v54, 4  ;;  %v429_v4 = vrot.slane %v427_v56, 5 }
  0x3b   : > { %v796_v1 = vsel %vm2704_vm3, %v791_v53, %v795_v36  ;;  %v806_v3 = vsel %vm2704_vm3, %v801_v55, %v805_v50  ;;  %v435_v5 = vrot.slane %v433_v57, 5  ;;  %v439_v6 = vrot.slane %v437_v58, 4  ;;  %v297_v58 = vld [vmem:[%s2690_s24 + $0x44] sm:$0x1] }
  0x3c   : > { %v808_v8 = vshrl.u32 %v264_v61, 16  ;;  %v811_v9 = vshll.u32 %v264_v61, 16  ;;  %v817_v10 = vshll.u32 %v265_v62, 16  ;;  %v821_v11 = vshrl.u32 %v265_v62, 16 }
  0x3d   : > { %v1167_v12 = vpack.c.b16 %v1107_v0, %v1106_v63  ;;  %v1138_v13 = vunpack.c.l.b16 %v796_v1  ;;  %v1139_v14 = vunpack.c.l.b16 %v806_v3  ;;  %v430_v15 = vor.u32 %v429_v4, %v426_v2 }
  0x3e   : > { %v440_v16 = vor.u32 %v439_v6, %v435_v5  ;;  %v443_v17 = vshll.u32 %v296_v7, 16  ;;  %v810_v18 = vrot.slane %v808_v8, 4  ;;  %v813_v19 = vrot.slane %v811_v9, 5  ;;  %v236_v9 = vld [vmem:[%s2690_s24 + $0x48] sm:$0xf] }
  0x3f   : > { %v819_v20 = vrot.slane %v817_v10, 5  ;;  %v823_v21 = vrot.slane %v821_v11, 4  ;;  %v1183_v23 = vpack.c.b16 %v1139_v14, %v1138_v13  ;;  %v431_v24 = vrot.slane %v430_v15, 4  ;;  %v237_v14 = vld [vmem:[%s2690_s24 + $0x4c] sm:$0xf] }
  0x40   : > { %v445_v25 = vrot.slane %v443_v17, 5  ;;  %v441_v26 = vrot.slane %v440_v16, 4  ;;  %v814_v27 = vor.u32 %v813_v19, %v810_v18  ;;  %v827_v29 = vshll.u32 %v312_v22, 16  ;;  %v268_v18 = vld [vmem:[%s2690_s24 + $0x108] sm:$0xf] }
  0x41   : > { %v824_v28 = vor.u32 %v823_v21, %v819_v20  ;;  %v436_v33 = vsel %vm2704_vm3, %v431_v24, %v435_v5  ;;  %v448_v34 = vshrl.u32 %v234_v30, 16  ;;  %v451_v35 = vshll.u32 %v234_v30, 16  ;;  %v313_v5 = vld [vmem:[%s2690_s24 + $0x104] sm:$0x1]  ;;  %v269_v22 = vld [vmem:[%s2690_s24 + $0x10c] sm:$0xf] }
  0x42   : > { %2347 = vmatmul.msk.bf16.gmra.mxu0 %vm1208_vm0, %v1166_v38  ;;  %v446_v36 = vsel %vm2704_vm3, %v441_v26, %v445_v25  ;;  %v815_v37 = vrot.slane %v814_v27, 4  ;;  %v829_v39 = vrot.slane %v827_v29, 5  ;;  %v457_v42 = vshll.u32 %v235_v31, 16  ;;  %v2557_v24 = vld [vmem:[%s2690_s24 + $0x3c] sm:$0xff] }
  0x43   : > { %v825_v38 = vrot.slane %v824_v28, 4  ;;  %v461_v43 = vshrl.u32 %v235_v31, 16  ;;  %v1108_v46 = vunpack.c.l.b16 %v436_v33  ;;  %v1109_v47 = vunpack.c.l.b16 %v446_v36 }
  0x44   : > { %v453_v49 = vrot.slane %v451_v35, 5  ;;  %v820_v50 = vsel %vm2704_vm3, %v815_v37, %v819_v20  ;;  %v832_v52 = vshrl.u32 %v266_v44, 16  ;;  %v835_v53 = vshll.u32 %v266_v44, 16 }
  0x45   : > { %2363 = vmatmul.msk.bf16.gmra.mxu2 %vm1208_vm0, %v1182_v48  ;;  %v450_v48 = vrot.slane %v448_v34, 4  ;;  %v830_v51 = vsel %vm2704_vm3, %v825_v38, %v829_v39  ;;  %v459_v54 = vrot.slane %v457_v42, 5  ;;  %v463_v55 = vrot.slane %v461_v43, 4 }
  0x46   : > { %v841_v56 = vshll.u32 %v267_v45, 16  ;;  %v845_v57 = vshrl.u32 %v267_v45, 16  ;;  %v1140_v61 = vunpack.c.l.b16 %v820_v50  ;;  %v1141_v62 = vunpack.c.l.b16 %v830_v51 }
  0x47   : > { %v834_v63 = vrot.slane %v832_v52, 4  ;;  %v837_v0 = vrot.slane %v835_v53, 5  ;;  %v464_v1 = vor.u32 %v463_v55, %v459_v54  ;;  %v467_v2 = vshll.u32 %v297_v58, 16  ;;  %v314_v52 = vld [vmem:[%s2690_s24 + $0x110] sm:$0x1] }
  0x48   : > { %v843_v3 = vrot.slane %v841_v56, 5  ;;  %v847_v4 = vrot.slane %v845_v57, 4  ;;  %v1184_v7 = vpack.c.b16 %v1141_v62, %v1140_v61  ;;  %v851_v13 = vshll.u32 %v313_v5, 16  ;;  %v239_v62 = vld [vmem:[%s2690_s24 + $0x58] sm:$0xf] }
  0x49   : > { %v838_v8 = vor.u32 %v837_v0, %v834_v63  ;;  %v465_v10 = vrot.slane %v464_v1, 4  ;;  %v469_v11 = vrot.slane %v467_v2, 5  ;;  %v472_v16 = vshrl.u32 %v236_v9, 16  ;;  %v270_v5 = vld [vmem:[%s2690_s24 + $0x114] sm:$0xf] }
  0x4a   : > { %2532 = vmatmul.msk.bf16.gmra.mxu3 %vm1208_vm0, %v2571_v59  ;;  %2516 = vmatmul.msk.bf16.gmra.mxu1 %vm1208_vm0, %v2555_v60  ;;  %v1168_v59 = vpack.c.b16 %v1109_v47, %v1108_v46  ;;  %v454_v60 = vor.u32 %v453_v49, %v450_v48  ;;  %v475_v17 = vshll.u32 %v236_v9, 16  ;;  %v481_v20 = vshll.u32 %v237_v14, 16 }
  0x4b   : > { %v839_v19 = vrot.slane %v838_v8, 4  ;;  %v485_v21 = vshrl.u32 %v237_v14, 16  ;;  %v470_v25 = vsel %vm2704_vm3, %v465_v10, %v469_v11  ;;  %v853_v27 = vrot.slane %v851_v13, 5  ;;  %v271_v10 = vld [vmem:[%s2690_s24 + $0x118] sm:$0xf] }
  0x4c   : > { %v455_v6 = vrot.slane %v454_v60, 4  ;;  %v856_v29 = vshrl.u32 %v268_v18, 16  ;;  %v859_v30 = vshll.u32 %v268_v18, 16  ;;  %v474_v31 = vrot.slane %v472_v16, 4  ;;  %v238_v60 = vld [vmem:[%s2690_s24 + $0x54] sm:$0xf] }
  0x4d   : > { %v477_v33 = vrot.slane %v475_v17, 5  ;;  %v865_v34 = vshll.u32 %v269_v22, 16  ;;  %v869_v35 = vshrl.u32 %v269_v22, 16  ;;  %v1111_v36 = vunpack.c.l.b16 %v470_v25 }
  0x4e   : > { %v460_v15 = vsel %vm2704_vm3, %v455_v6, %v459_v54  ;;  %v844_v37 = vsel %vm2704_vm3, %v839_v19, %v843_v3  ;;  %v483_v38 = vrot.slane %v481_v20, 5  ;;  %v487_v39 = vrot.slane %v485_v21, 4  ;;  %v2574_v6 = vld [vmem:[%s2690_s24 + $0x108] sm:$0xff] }
  0x4f   : > { %v1110_v28 = vunpack.c.l.b16 %v460_v15  ;;  %v858_v42 = vrot.slane %v856_v29, 4  ;;  %v861_v43 = vrot.slane %v859_v30, 5  ;;  %v1142_v44 = vunpack.c.l.b16 %v844_v37  ;;  %v315_v30 = vld [vmem:[%s2690_s24 + $0x11c] sm:$0x1] }
  0x50   : > { %v478_v45 = vor.u32 %v477_v33, %v474_v31  ;;  %v867_v46 = vrot.slane %v865_v34, 5  ;;  %v871_v47 = vrot.slane %v869_v35, 4  ;;  %v488_v50 = vor.u32 %v487_v39, %v483_v38 }
  0x51   : > { %v1169_v48 = vpack.c.b16 %v1111_v36, %v1110_v28  ;;  %v862_v53 = vor.u32 %v861_v43, %v858_v42  ;;  %v875_v56 = vshll.u32 %v314_v52, 16  ;;  %v505_v8 = vshll.u32 %v239_v62, 16  ;;  %v240_v43 = vld [vmem:[%s2690_s24 + $0x60] sm:$0xf]  ;;  %v2575_v52 = vld [vmem:[%s2690_s24 + $0x114] sm:$0xff] }
  0x52   : > { %2348 = vmatmul.msk.bf16.gmra.mxu0 %vm1208_vm0, %v1167_v12  ;;  %v848_v12 = vor.u32 %v847_v4, %v843_v3  ;;  %v479_v54 = vrot.slane %v478_v45, 4  ;;  %v872_v55 = vor.u32 %v871_v47, %v867_v46  ;;  %v489_v58 = vrot.slane %v488_v50, 4  ;;  %v272_v47 = vld [vmem:[%s2690_s24 + $0x120] sm:$0xf] }
  0x53   : > { %v863_v61 = vrot.slane %v862_v53, 4  ;;  %v877_v1 = vrot.slane %v875_v56, 5  ;;  %v496_v3 = vshrl.u32 %v238_v60, 16  ;;  %v499_v4 = vshll.u32 %v238_v60, 16  ;;  %v2559_v53 = vld [vmem:[%s2690_s24 + $0x54] sm:$0xff] }
  0x54   : > { %v849_v26 = vrot.slane %v848_v12, 4  ;;  %v484_v63 = vsel %vm2704_vm3, %v479_v54, %v483_v38  ;;  %v873_v0 = vrot.slane %v872_v55, 4  ;;  %v509_v9 = vshrl.u32 %v239_v62, 16 }
  0x55   : > { %2364 = vmatmul.msk.bf16.gmra.mxu2 %vm1208_vm0, %v1183_v23  ;;  %v2573_v23 = vld [vmem:[%s2690_s24 + $0xfc] sm:$0xff]  ;;  %v1112_v11 = vunpack.c.l.b16 %v484_v63  ;;  %v868_v12 = vsel %vm2704_vm3, %v863_v61, %v867_v46  ;;  %v880_v15 = vshrl.u32 %v270_v5, 16  ;;  %v883_v16 = vshll.u32 %v270_v5, 16 }
  0x56   : > { %v878_v14 = vsel %vm2704_vm3, %v873_v0, %v877_v1  ;;  %v498_v17 = vrot.slane %v496_v3, 4  ;;  %v501_v18 = vrot.slane %v499_v4, 5  ;;  %v889_v19 = vshll.u32 %v271_v10, 16 }
  0x57   : > { %v893_v20 = vshrl.u32 %v271_v10, 16  ;;  %v507_v21 = vrot.slane %v505_v8, 5  ;;  %v511_v22 = vrot.slane %v509_v9, 4  ;;  %v1145_v25 = vunpack.c.l.b16 %v878_v14 }
  0x58   : > { %v502_v29 = vor.u32 %v501_v18, %v498_v17  ;;  %v891_v31 = vrot.slane %v889_v19, 5  ;;  %v899_v37 = vshll.u32 %v315_v30, 16  ;;  %v520_v50 = vshrl.u32 %v240_v43, 16  ;;  %v274_v30 = vld [vmem:[%s2690_s24 + $0x12c] sm:$0xf] }
  0x59   : > { %v895_v33 = vrot.slane %v893_v20, 4  ;;  %v512_v34 = vor.u32 %v511_v22, %v507_v21 }
  0x5a   : > { %2533 = vmatmul.msk.bf16.gmra.mxu3 %vm1208_vm0, %v2572_v40  ;;  %2517 = vmatmul.msk.bf16.gmra.mxu1 %vm1208_vm0, %v2556_v41  ;;  %v854_v40 = vsel %vm2704_vm3, %v849_v26, %v853_v27  ;;  %v298_v41 = vld [vmem:[%s2690_s24 + $0x50] sm:$0x1]  ;;  %v882_v26 = vrot.slane %v880_v15, 4  ;;  %v885_v27 = vrot.slane %v883_v16, 5  ;;  %v503_v39 = vrot.slane %v502_v29, 4 }
  0x5b   : > { %v1143_v49 = vunpack.c.l.b16 %v854_v40  ;;  %v491_v51 = vshll.u32 %v298_v41, 16  ;;  %v896_v40 = vor.u32 %v895_v33, %v891_v31  ;;  %v513_v41 = vrot.slane %v512_v34, 4  ;;  %v316_v15 = vld [vmem:[%s2690_s24 + $0x128] sm:$0x1]  ;;  %v275_v34 = vld [vmem:[%s2690_s24 + $0x130] sm:$0xf] }
  0x5c   : > { %v886_v36 = vor.u32 %v885_v27, %v882_v26  ;;  %v901_v46 = vrot.slane %v899_v37, 5  ;;  %v522_v0 = vrot.slane %v520_v50, 4  ;;  %v923_v20 = vshll.u32 %v316_v15, 16  ;;  %v243_v26 = vld [vmem:[%s2690_s24 + $0x70] sm:$0xf] }
  0x5d   : > { %v1185_v57 = vpack.c.b16 %v1143_v49, %v1142_v44  ;;  %v241_v44 = vld [vmem:[%s2690_s24 + $0x64] sm:$0xf]  ;;  %v897_v49 = vrot.slane %v896_v40, 4  ;;  %v557_v33 = vshrl.u32 %v243_v26, 16 }
  0x5e   : > { %v887_v45 = vrot.slane %v886_v36, 4  ;;  %v529_v55 = vshll.u32 %v241_v44, 16  ;;  %v533_v56 = vshrl.u32 %v241_v44, 16  ;;  %v2560_v36 = vld [vmem:[%s2690_s24 + $0x60] sm:$0xff]  ;;  %v925_v40 = vrot.slane %v923_v20, 5 }
  0x5f   : > { %v902_v63 = vsel %vm2704_vm3, %v897_v49, %v901_v46  ;;  %v931_v44 = vshll.u32 %v274_v30, 16 }
  0x60   : > { %v892_v61 = vsel %vm2704_vm3, %v887_v45, %v891_v31  ;;  %v535_v3 = vrot.slane %v533_v56, 4  ;;  %v553_v31 = vshll.u32 %v243_v26, 16  ;;  %v2561_v26 = vld [vmem:[%s2690_s24 + $0x6c] sm:$0xff] }
  0x61   : > { %v1146_v10 = vunpack.c.l.b16 %v892_v61 }
  0x62   : > { %2349 = vmatmul.msk.bf16.gmra.mxu0 %vm1208_vm0, %v1168_v59  ;;  %v493_v59 = vrot.slane %v491_v51, 5  ;;  %v523_v51 = vshll.u32 %v240_v43, 16  ;;  %v928_v43 = vshrl.u32 %v274_v30, 16 }
  0x64   : > { %v494_v2 = vsel %vm2704_vm3, %v489_v58, %v493_v59  ;;  %v904_v58 = vshrl.u32 %v272_v47, 16  ;;  %v907_v59 = vshll.u32 %v272_v47, 16  ;;  %v525_v1 = vrot.slane %v523_v51, 5 }
  0x65   : > { %2365 = vmatmul.msk.bf16.gmra.mxu2 %vm1208_vm0, %v1184_v7  ;;  %v2558_v7 = vld [vmem:[%s2690_s24 + $0x48] sm:$0xff]  ;;  %v1113_v13 = vunpack.c.l.b16 %v494_v2  ;;  %v531_v2 = vrot.slane %v529_v55, 5  ;;  %v937_v47 = vshll.u32 %v275_v34, 16  ;;  %v555_v51 = vrot.slane %v553_v31, 5 }
  0x66   : > { %v909_v8 = vrot.slane %v907_v59, 5  ;;  %v930_v56 = vrot.slane %v928_v43, 4 }
  0x67   : > { %v1170_v28 = vpack.c.b16 %v1113_v13, %v1112_v11  ;;  %v1147_v11 = vunpack.c.l.b16 %v902_v63  ;;  %v536_v13 = vor.u32 %v535_v3, %v531_v2  ;;  %v939_v59 = vrot.slane %v937_v47, 5  ;;  %v302_v47 = vld [vmem:[%s2690_s24 + $0x80] sm:$0x1] }
  0x69   : > { %v1187_v19 = vpack.c.b16 %v1147_v11, %v1146_v10 }
  0x6a   : > { %2534 = vmatmul.msk.bf16.gmra.mxu3 %vm1208_vm0, %v2573_v23  ;;  %2518 = vmatmul.msk.bf16.gmra.mxu1 %vm1208_vm0, %v2557_v24  ;;  %v299_v23 = vld [vmem:[%s2690_s24 + $0x5c] sm:$0x1]  ;;  %v1144_v24 = vunpack.c.l.b16 %v868_v12  ;;  %v526_v12 = vor.u32 %v525_v1, %v522_v0 }
  0x6b   : > { %v515_v35 = vshll.u32 %v299_v23, 16  ;;  %v537_v23 = vrot.slane %v536_v13, 4  ;;  %v244_v13 = vld [vmem:[%s2690_s24 + $0x78] sm:$0xf] }
  0x6c   : > { %v1186_v38 = vpack.c.b16 %v1145_v25, %v1144_v24  ;;  %v527_v22 = vrot.slane %v526_v12, 4 }
  0x6d   : > { %v517_v42 = vrot.slane %v515_v35, 5  ;;  %v2576_v35 = vld [vmem:[%s2690_s24 + $0x120] sm:$0xff] }
  0x6e   : > { %v532_v37 = vsel %vm2704_vm3, %v527_v22, %v531_v2  ;;  %v317_v2 = vld [vmem:[%s2690_s24 + $0x134] sm:$0x1]  ;;  %v571_v22 = vshll.u32 %v244_v13, 16 }
  0x6f   : > { %v518_v54 = vsel %vm2704_vm3, %v513_v41, %v517_v42  ;;  %v1116_v49 = vunpack.c.l.b16 %v532_v37 }
  0x70   : > { %v1115_v62 = vunpack.c.l.b16 %v518_v54  ;;  %v301_v54 = vld [vmem:[%s2690_s24 + $0x74] sm:$0x1] }
  0x71   : > { %v563_v1 = vshll.u32 %v301_v54, 16 }
  0x72   : > { %2350 = vmatmul.msk.bf16.gmra.mxu0 %vm1208_vm0, %v1169_v48  ;;  %v508_v48 = vsel %vm2704_vm3, %v503_v39, %v507_v21  ;;  %v242_v21 = vld [vmem:[%s2690_s24 + $0x6c] sm:$0xf] }
  0x73   : > { %v1114_v60 = vunpack.c.l.b16 %v508_v48  ;;  %v547_v29 = vshll.u32 %v242_v21, 16  ;;  %v941_v48 = vshrl.u32 %v275_v34, 16  ;;  %v565_v12 = vrot.slane %v563_v1, 5 }
  0x75   : > { %2366 = vmatmul.msk.bf16.gmra.mxu2 %vm1208_vm0, %v1185_v57  ;;  %v273_v57 = vld [vmem:[%s2690_s24 + $0x124] sm:$0xf]  ;;  %v1171_v9 = vpack.c.b16 %v1115_v62, %v1114_v60  ;;  %v549_v46 = vrot.slane %v547_v29, 5  ;;  %v943_v60 = vrot.slane %v941_v48, 4 }
  0x76   : > { %v913_v4 = vshll.u32 %v273_v57, 16  ;;  %v917_v5 = vshrl.u32 %v273_v57, 16 }
  0x78   : > { %v915_v16 = vrot.slane %v913_v4, 5  ;;  %v919_v17 = vrot.slane %v917_v5, 4 }
  0x7a   : > { %2535 = vmatmul.msk.bf16.gmra.mxu3 %vm1208_vm0, %v2574_v6  ;;  %2519 = vmatmul.msk.bf16.gmra.mxu1 %vm1208_vm0, %v2558_v7  ;;  %v300_v6 = vld [vmem:[%s2690_s24 + $0x68] sm:$0x1]  ;;  %v906_v7 = vrot.slane %v904_v58, 4  ;;  %v920_v25 = vor.u32 %v919_v17, %v915_v16  ;;  %v933_v58 = vrot.slane %v931_v44, 5 }
  0x7b   : > { %v539_v14 = vshll.u32 %v300_v6, 16 }
  0x7c   : > { %v910_v18 = vor.u32 %v909_v8, %v906_v7  ;;  %v921_v39 = vrot.slane %v920_v25, 4  ;;  %v934_v7 = vor.u32 %v933_v58, %v930_v56  ;;  %v944_v8 = vor.u32 %v943_v60, %v939_v59  ;;  %v2577_v25 = vld [vmem:[%s2690_s24 + $0x12c] sm:$0xff]  ;;  %v318_v58 = vld [vmem:[%s2690_s24 + $0x140] sm:$0x1] }
  0x7d   : > { %v541_v24 = vrot.slane %v539_v14, 5  ;;  %v245_v14 = vld [vmem:[%s2690_s24 + $0x7c] sm:$0xf] }
  0x7e   : > { %v911_v27 = vrot.slane %v910_v18, 4  ;;  %v945_v17 = vrot.slane %v944_v8, 4 }
  0x80   : > { %v916_v42 = vsel %vm2704_vm3, %v911_v27, %v915_v16  ;;  %v935_v16 = vrot.slane %v934_v7, 4  ;;  %v577_v27 = vshll.u32 %v245_v14, 16 }
  0x81   : > { %v1148_v55 = vunpack.c.l.b16 %v916_v42 }
  0x82   : > { %2351 = vmatmul.msk.bf16.gmra.mxu0 %vm1208_vm0, %v1170_v28  ;;  %v544_v28 = vshrl.u32 %v242_v21, 16  ;;  %v568_v21 = vshrl.u32 %v244_v13, 16  ;;  %v579_v43 = vrot.slane %v577_v27, 5  ;;  %v278_v13 = vld [vmem:[%s2690_s24 + $0x144] sm:$0xf] }
  0x84   : > { %v546_v45 = vrot.slane %v544_v28, 4  ;;  %v581_v28 = vshrl.u32 %v245_v14, 16 }
  0x85   : > { %2367 = vmatmul.msk.bf16.gmra.mxu2 %vm1208_vm0, %v1186_v38  ;;  %v542_v38 = vsel %vm2704_vm3, %v537_v23, %v541_v24  ;;  %v276_v23 = vld [vmem:[%s2690_s24 + $0x138] sm:$0xf] }
  0x86   : > { %v1117_v50 = vunpack.c.l.b16 %v542_v38  ;;  %v550_v57 = vor.u32 %v549_v46, %v546_v45  ;;  %v952_v38 = vshrl.u32 %v276_v23, 16  ;;  %v955_v42 = vshll.u32 %v276_v23, 16 }
  0x87   : > { %v583_v44 = vrot.slane %v581_v28, 4 }
  0x88   : > { %v1172_v62 = vpack.c.b16 %v1117_v50, %v1116_v49  ;;  %v551_v6 = vrot.slane %v550_v57, 4  ;;  %v957_v54 = vrot.slane %v955_v42, 5  ;;  %v587_v57 = vshll.u32 %v302_v47, 16 }
  0x89   : > { %v584_v56 = vor.u32 %v583_v44, %v579_v43 }
  0x8a   : > { %2536 = vmatmul.msk.bf16.gmra.mxu3 %vm1208_vm0, %v2575_v52  ;;  %2520 = vmatmul.msk.bf16.gmra.mxu1 %vm1208_vm0, %v2559_v53  ;;  %v559_v52 = vrot.slane %v557_v33, 4  ;;  %v926_v53 = vsel %vm2704_vm3, %v921_v39, %v925_v40  ;;  %v556_v15 = vsel %vm2704_vm3, %v551_v6, %v555_v51  ;;  %v277_v33 = vld [vmem:[%s2690_s24 + $0x13c] sm:$0xf]  ;;  %v570_v40 = vrot.slane %v568_v21, 4  ;;  %v247_v6 = vld [vmem:[%s2690_s24 + $0x88] sm:$0xf] }
  0x8b   : > { %v1149_v63 = vunpack.c.l.b16 %v926_v53  ;;  %v1118_v31 = vunpack.c.l.b16 %v556_v15  ;;  %v961_v45 = vshll.u32 %v277_v33, 16  ;;  %v965_v46 = vshrl.u32 %v277_v33, 16  ;;  %v2578_v21 = vld [vmem:[%s2690_s24 + $0x138] sm:$0xff] }
  0x8c   : > { %v560_v0 = vor.u32 %v559_v52, %v555_v51  ;;  %v954_v53 = vrot.slane %v952_v38, 4  ;;  %v585_v8 = vrot.slane %v584_v56, 4  ;;  %v601_v14 = vshll.u32 %v247_v6, 16 }
  0x8d   : > { %v1188_v10 = vpack.c.b16 %v1149_v63, %v1148_v55  ;;  %v967_v60 = vrot.slane %v965_v46, 4  ;;  %v605_v15 = vshrl.u32 %v247_v6, 16  ;;  %v979_v33 = vshll.u32 %v278_v13, 16 }
  0x8e   : > { %v561_v11 = vrot.slane %v560_v0, 4  ;;  %v246_v0 = vld [vmem:[%s2690_s24 + $0x84] sm:$0xf] }
  0x90   : > { %v566_v20 = vsel %vm2704_vm3, %v561_v11, %v565_v12  ;;  %v592_v11 = vshrl.u32 %v246_v0, 16  ;;  %v595_v12 = vshll.u32 %v246_v0, 16 }
  0x92   : > { %2352 = vmatmul.msk.bf16.gmra.mxu0 %vm1208_vm0, %v1171_v9  ;;  %v947_v9 = vshll.u32 %v317_v2, 16 }
  0x94   : > { %v949_v18 = vrot.slane %v947_v9, 5  ;;  %v589_v9 = vrot.slane %v587_v57, 5 }
  0x95   : > { %2368 = vmatmul.msk.bf16.gmra.mxu2 %vm1208_vm0, %v1187_v19 }
  0x96   : > { %v950_v37 = vsel %vm2704_vm3, %v945_v17, %v949_v18 }
  0x97   : > { %v1751_v41 = vpop.f32.mrf.mxu1  ;;  %v1151_v51 = vunpack.c.l.b16 %v950_v37 }
  0x9a   : > { %2537 = vmatmul.msk.bf16.gmra.mxu3 %vm1208_vm0, %v2576_v35  ;;  %2521 = vmatmul.msk.bf16.gmra.mxu1 %vm1208_vm0, %v2560_v36  ;;  %v1119_v35 = vunpack.c.l.b16 %v566_v20  ;;  %v940_v36 = vsel %vm2704_vm3, %v935_v16, %v939_v59  ;;  %v963_v59 = vrot.slane %v961_v45, 5 }
  0x9b   : > { %v1150_v49 = vunpack.c.l.b16 %v940_v36  ;;  %v607_v36 = vrot.slane %v605_v15, 4 }
  0x9c   : > { %v1173_v48 = vpack.c.b16 %v1119_v35, %v1118_v31  ;;  %v597_v31 = vrot.slane %v595_v12, 5  ;;  %v603_v35 = vrot.slane %v601_v14, 5  ;;  %v249_v12 = vld [vmem:[%s2690_s24 + $0x94] sm:$0xf] }
  0x9d   : > { %v1831_v61 = vpop.f32.mrf.mxu3  ;;  %v1189_v2 = vpack.c.b16 %v1151_v51, %v1150_v49 }
  0x9e   : > { %v608_v49 = vor.u32 %v607_v36, %v603_v35 }
  0x9f   : > { %v1314_v3 = vpop.f32.mrf.mxu0  ;;  %v1753_v5 = vpop.f32.mrf.mxu1 }
  0xa0   : > { %v2882_v4 = vadd.f32 %v1751_v41, %v1314_v3  ;;  %v573_v41 = vrot.slane %v571_v22, 5  ;;  %v958_v3 = vor.u32 %v957_v54, %v954_v53  ;;  %v2562_v22 = vld [vmem:[%s2690_s24 + $0x78] sm:$0xff] }
  0xa2   : > { %2353 = vmatmul.msk.bf16.gmra.mxu0 %vm1208_vm0, %v1172_v62  ;;  %v574_v52 = vor.u32 %v573_v41, %v570_v40  ;;  %v959_v17 = vrot.slane %v958_v3, 4  ;;  %v609_v3 = vrot.slane %v608_v49, 4 }
  0xa4   : > { %v575_v7 = vrot.slane %v574_v52, 4  ;;  %v964_v44 = vsel %vm2704_vm3, %v959_v17, %v963_v59 }
  0xa5   : > { %2369 = vmatmul.msk.bf16.gmra.mxu2 %vm1208_vm0, %v1188_v10  ;;  %v1833_v19 = vpop.f32.mrf.mxu3  ;;  %v968_v10 = vor.u32 %v967_v60, %v963_v59  ;;  %v1152_v56 = vunpack.c.l.b16 %v964_v44 }
  0xa6   : > { %v580_v23 = vsel %vm2704_vm3, %v575_v7, %v579_v43  ;;  %v303_v43 = vld [vmem:[%s2690_s24 + $0x8c] sm:$0x1] }
  0xa7   : > { %v1316_v24 = vpop.f32.mrf.mxu0  ;;  %v1756_v30 = vpop.f32.mrf.mxu1  ;;  %v1120_v41 = vunpack.c.l.b16 %v580_v23  ;;  %v611_v51 = vshll.u32 %v303_v43, 16  ;;  %v625_v23 = vshll.u32 %v249_v12, 16 }
  0xa8   : > { %v2895_v29 = vadd.f32 %v1753_v5, %v1316_v24  ;;  %v1394_v34 = vpop.f32.mrf.mxu2  ;;  %v971_v5 = vshll.u32 %v318_v58, 16  ;;  %v590_v24 = vsel %vm2704_vm3, %v585_v8, %v589_v9  ;;  %v248_v9 = vld [vmem:[%s2690_s24 + $0x90] sm:$0xf] }
  0xa9   : > { %v2902_v39 = vadd.f32 %v1831_v61, %v1394_v34  ;;  %v1121_v42 = vunpack.c.l.b16 %v590_v24  ;;  %v616_v17 = vshrl.u32 %v248_v9, 16  ;;  %v629_v24 = vshrl.u32 %v249_v12, 16 }
  0xaa   : > { %2538 = vmatmul.msk.bf16.gmra.mxu3 %vm1208_vm0, %v2577_v25  ;;  %2522 = vmatmul.msk.bf16.gmra.mxu1 %vm1208_vm0, %v2561_v26  ;;  %v973_v18 = vrot.slane %v971_v5, 5  ;;  %v969_v25 = vrot.slane %v968_v10, 4  ;;  %v976_v26 = vshrl.u32 %v278_v13, 16  ;;  %v613_v5 = vrot.slane %v611_v51, 5 }
  0xab   : > { %v618_v36 = vrot.slane %v616_v17, 4 }
  0xac   : > { %v974_v45 = vsel %vm2704_vm3, %v969_v25, %v973_v18  ;;  %v978_v47 = vrot.slane %v976_v26, 4  ;;  %v614_v14 = vsel %vm2704_vm3, %v609_v3, %v613_v5  ;;  %v619_v18 = vshll.u32 %v248_v9, 16  ;;  %v281_v25 = vld [vmem:[%s2690_s24 + $0x154] sm:$0xf] }
  0xad   : > { %v1836_v50 = vpop.f32.mrf.mxu3  ;;  %v1153_v57 = vunpack.c.l.b16 %v974_v45  ;;  %v1009_v43 = vshll.u32 %v281_v25, 16  ;;  %v1013_v44 = vshrl.u32 %v281_v25, 16  ;;  %v627_v45 = vrot.slane %v625_v23, 5  ;;  %v2564_v25 = vld [vmem:[%s2690_s24 + $0x90] sm:$0xff] }
  0xaf   : > { %v1319_v55 = vpop.f32.mrf.mxu0  ;;  %v1758_v62 = vpop.f32.mrf.mxu1  ;;  %v1190_v8 = vpack.c.b16 %v1153_v57, %v1152_v56  ;;  %v1015_v56 = vrot.slane %v1013_v44, 4 }
  0xb0   : > { %v2908_v61 = vadd.f32 %v1756_v30, %v1319_v55  ;;  %v1396_v63 = vpop.f32.mrf.mxu2  ;;  %v594_v30 = vrot.slane %v592_v11, 4  ;;  %v1174_v55 = vpack.c.b16 %v1121_v42, %v1120_v41  ;;  %v621_v42 = vrot.slane %v619_v18, 5  ;;  %v282_v18 = vld [vmem:[%s2690_s24 + $0x15c] sm:$0xf] }
  0xb1   : > { %v2911_v1 = vadd.f32 %v1833_v19, %v1396_v63  ;;  %v279_v19 = vld [vmem:[%s2690_s24 + $0x148] sm:$0xf] }
  0xb2   : > { %2354 = vmatmul.msk.bf16.gmra.mxu0 %vm1208_vm0, %v1173_v48  ;;  %v985_v37 = vshll.u32 %v279_v19, 16  ;;  %v989_v38 = vshrl.u32 %v279_v19, 16  ;;  %v598_v46 = vor.u32 %v597_v31, %v594_v30  ;;  %v981_v48 = vrot.slane %v979_v33, 5  ;;  %v280_v19 = vld [vmem:[%s2690_s24 + $0x150] sm:$0xf] }
  0xb3   : > { %v1123_v31 = vunpack.c.l.b16 %v614_v14  ;;  %v251_v14 = vld [vmem:[%s2690_s24 + $0xa0] sm:$0xf] }
  0xb4   : > { %v987_v52 = vrot.slane %v985_v37, 5  ;;  %v991_v53 = vrot.slane %v989_v38, 4  ;;  %v1000_v37 = vshrl.u32 %v280_v19, 16  ;;  %v1003_v38 = vshll.u32 %v280_v19, 16 }
  0xb5   : > { %2370 = vmatmul.msk.bf16.gmra.mxu2 %vm1208_vm0, %v1189_v2  ;;  %v1838_v16 = vpop.f32.mrf.mxu3  ;;  %v599_v2 = vrot.slane %v598_v46, 4  ;;  %v631_v46 = vrot.slane %v629_v24, 4  ;;  %v2580_v24 = vld [vmem:[%s2690_s24 + $0x150] sm:$0xff] }
  0xb6   : > { %v992_v6 = vor.u32 %v991_v53, %v987_v52  ;;  %v1002_v51 = vrot.slane %v1000_v37, 4 }
  0xb7   : > { %v1321_v20 = vpop.f32.mrf.mxu0  ;;  %v1761_v28 = vpop.f32.mrf.mxu1  ;;  %v604_v13 = vsel %vm2704_vm3, %v599_v2, %v603_v35 }
  0xb8   : > { %v2924_v27 = vadd.f32 %v1758_v62, %v1321_v20  ;;  %v1399_v34 = vpop.f32.mrf.mxu2  ;;  %v982_v62 = vor.u32 %v981_v48, %v978_v47  ;;  %v993_v15 = vrot.slane %v992_v6, 4  ;;  %v1122_v30 = vunpack.c.l.b16 %v604_v13  ;;  %v304_v47 = vld [vmem:[%s2690_s24 + $0x98] sm:$0x1]  ;;  %v250_v6 = vld [vmem:[%s2690_s24 + $0x9c] sm:$0xf] }
  0xb9   : > { %v2926_v40 = vadd.f32 %v1836_v50, %v1399_v34  ;;  %v319_v50 = vld [vmem:[%s2690_s24 + $0x14c] sm:$0x1]  ;;  %v643_v17 = vshll.u32 %v250_v6, 16 }
  0xba   : > { %2539 = vmatmul.msk.bf16.gmra.mxu3 %vm1208_vm0, %v2578_v21  ;;  %2523 = vmatmul.msk.bf16.gmra.mxu1 %vm1208_vm0, %v2562_v22  ;;  %v995_v63 = vshll.u32 %v319_v50, 16  ;;  %v983_v10 = vrot.slane %v982_v62, 4  ;;  %v2579_v21 = vld [vmem:[%s2690_s24 + $0x144] sm:$0xff]  ;;  %v1005_v50 = vrot.slane %v1003_v38, 5  ;;  %v1175_v53 = vpack.c.b16 %v1123_v31, %v1122_v30  ;;  %v320_v62 = vld [vmem:[%s2690_s24 + $0x158] sm:$0x1] }
  0xbb   : > { %v2563_v22 = vld [vmem:[%s2690_s24 + $0x84] sm:$0xff]  ;;  %v649_v30 = vshll.u32 %v251_v14, 16  ;;  %v653_v31 = vshrl.u32 %v251_v14, 16  ;;  %v645_v37 = vrot.slane %v643_v17, 5  ;;  %v283_v38 = vld [vmem:[%s2690_s24 + $0x160] sm:$0xf] }
  0xbc   : > { %v997_v11 = vrot.slane %v995_v63, 5  ;;  %v988_v33 = vsel %vm2704_vm3, %v983_v10, %v987_v52  ;;  %v1006_v5 = vor.u32 %v1005_v50, %v1002_v51  ;;  %v1033_v50 = vshll.u32 %v283_v38, 16 }
  0xbd   : > { %v1841_v54 = vpop.f32.mrf.mxu3  ;;  %v1154_v48 = vunpack.c.l.b16 %v988_v33  ;;  %v1024_v33 = vshrl.u32 %v282_v18, 16  ;;  %v655_v51 = vrot.slane %v653_v31, 4 }
  0xbe   : > { %v998_v35 = vsel %vm2704_vm3, %v993_v15, %v997_v11  ;;  %v1019_v11 = vshll.u32 %v320_v62, 16  ;;  %v640_v15 = vshrl.u32 %v250_v6, 16 }
  0xbf   : > { %v1324_v58 = vpop.f32.mrf.mxu0  ;;  %v1763_v59 = vpop.f32.mrf.mxu1  ;;  %v1155_v49 = vunpack.c.l.b16 %v998_v35 }
  0xc0   : > { %v2936_v60 = vadd.f32 %v1761_v28, %v1324_v58  ;;  %v1401_v0 = vpop.f32.mrf.mxu2  ;;  %v632_v58 = vor.u32 %v631_v46, %v627_v45 }
  0xc1   : > { %v2938_v7 = vadd.f32 %v1838_v16, %v1401_v0  ;;  %v1191_v3 = vpack.c.b16 %v1155_v49, %v1154_v48  ;;  %v651_v49 = vrot.slane %v649_v30, 5 }
  0xc2   : > { %2355 = vmatmul.msk.bf16.gmra.mxu0 %vm1208_vm0, %v1174_v55  ;;  %v1011_v55 = vrot.slane %v1009_v43, 5  ;;  %v633_v12 = vrot.slane %v632_v58, 4 }
  0xc4   : > { %v1016_v10 = vor.u32 %v1015_v56, %v1011_v55 }
  0xc5   : > { %2371 = vmatmul.msk.bf16.gmra.mxu2 %vm1208_vm0, %v1190_v8  ;;  %v1843_v16 = vpop.f32.mrf.mxu3 }
  0xc7   : > { %v1326_v20 = vpop.f32.mrf.mxu0  ;;  %v1766_v28 = vpop.f32.mrf.mxu1 }
  0xc8   : > { %v2952_v26 = vadd.f32 %v1763_v59, %v1326_v20  ;;  %v1404_v34 = vpop.f32.mrf.mxu2  ;;  %v635_v59 = vshll.u32 %v304_v47, 16  ;;  %v1007_v20 = vrot.slane %v1006_v5, 4  ;;  %v1035_v5 = vrot.slane %v1033_v50, 5 }
  0xc9   : > { %v2958_v41 = vadd.f32 %v1841_v54, %v1404_v34  ;;  %v622_v54 = vor.u32 %v621_v42, %v618_v36  ;;  %v642_v36 = vrot.slane %v640_v15, 4  ;;  %v1027_v42 = vshll.u32 %v282_v18, 16  ;;  %v252_v18 = vld [vmem:[%s2690_s24 + $0xa8] sm:$0xf] }
  0xca   : > { %2540 = vmatmul.msk.bf16.gmra.mxu3 %vm1208_vm0, %v2579_v21  ;;  %2524 = vmatmul.msk.bf16.gmra.mxu1 %vm1208_vm0, %v2563_v22  ;;  %v637_v13 = vrot.slane %v635_v59, 5  ;;  %v1017_v21 = vrot.slane %v1016_v10, 4  ;;  %v1021_v22 = vrot.slane %v1019_v11, 5  ;;  %v1012_v47 = vsel %vm2704_vm3, %v1007_v20, %v1011_v55 }
  0xcb   : > { %v623_v9 = vrot.slane %v622_v54, 4  ;;  %v305_v54 = vld [vmem:[%s2690_s24 + $0xa4] sm:$0x1]  ;;  %v646_v56 = vor.u32 %v645_v37, %v642_v36  ;;  %v1156_v62 = vunpack.c.l.b16 %v1012_v47  ;;  %v667_v30 = vshll.u32 %v252_v18, 16  ;;  %v285_v36 = vld [vmem:[%s2690_s24 + $0x16c] sm:$0xf] }
  0xcc   : > { %v1022_v48 = vsel %vm2704_vm3, %v1017_v21, %v1021_v22 }
  0xcd   : > { %v1846_v52 = vpop.f32.mrf.mxu3  ;;  %v1157_v55 = vunpack.c.l.b16 %v1022_v48  ;;  %v647_v11 = vrot.slane %v646_v56, 4 }
  0xcf   : > { %v1329_v57 = vpop.f32.mrf.mxu0  ;;  %v1768_v0 = vpop.f32.mrf.mxu1  ;;  %v1192_v17 = vpack.c.b16 %v1157_v55, %v1156_v62 }
  0xd0   : > { %v2964_v63 = vadd.f32 %v1766_v28, %v1329_v57  ;;  %v1406_v2 = vpop.f32.mrf.mxu2  ;;  %v638_v28 = vsel %vm2704_vm3, %v633_v12, %v637_v13  ;;  %v1029_v57 = vrot.slane %v1027_v42, 5  ;;  %v321_v12 = vld [vmem:[%s2690_s24 + $0x164] sm:$0x1]  ;;  %v2565_v42 = vld [vmem:[%s2690_s24 + $0x9c] sm:$0xff] }
  0xd1   : > { %v2967_v8 = vadd.f32 %v1843_v16, %v1406_v2  ;;  %v628_v16 = vsel %vm2704_vm3, %v623_v9, %v627_v45  ;;  %v1125_v46 = vunpack.c.l.b16 %v638_v28  ;;  %v656_v2 = vor.u32 %v655_v51, %v651_v49 }
  0xd2   : > { %2356 = vmatmul.msk.bf16.gmra.mxu0 %vm1208_vm0, %v1175_v53  ;;  %v1124_v44 = vunpack.c.l.b16 %v628_v16  ;;  %v1037_v53 = vshrl.u32 %v283_v38, 16  ;;  %v1043_v22 = vshll.u32 %v321_v12, 16  ;;  %v664_v28 = vshrl.u32 %v252_v18, 16  ;;  %v2581_v38 = vld [vmem:[%s2690_s24 + $0x15c] sm:$0xff] }
  0xd3   : > { %v657_v16 = vrot.slane %v656_v2, 4 }
  0xd4   : > { %v1176_v59 = vpack.c.b16 %v1125_v46, %v1124_v44  ;;  %v1039_v6 = vrot.slane %v1037_v53, 4  ;;  %v1045_v47 = vrot.slane %v1043_v22, 5  ;;  %v666_v56 = vrot.slane %v664_v28, 4 }
  0xd5   : > { %2372 = vmatmul.msk.bf16.gmra.mxu2 %vm1208_vm0, %v1191_v3  ;;  %v1848_v19 = vpop.f32.mrf.mxu3  ;;  %v659_v3 = vshll.u32 %v305_v54, 16 }
  0xd6   : > { %v1040_v21 = vor.u32 %v1039_v6, %v1035_v5 }
  0xd7   : > { %v1331_v23 = vpop.f32.mrf.mxu0  ;;  %v1771_v35 = vpop.f32.mrf.mxu1  ;;  %v661_v20 = vrot.slane %v659_v3, 5 }
  0xd8   : > { %v2979_v34 = vadd.f32 %v1768_v0, %v1331_v23  ;;  %v1409_v43 = vpop.f32.mrf.mxu2  ;;  %v253_v23 = vld [vmem:[%s2690_s24 + $0xac] sm:$0xf]  ;;  %v1041_v46 = vrot.slane %v1040_v21, 4  ;;  %v322_v21 = vld [vmem:[%s2690_s24 + $0x170] sm:$0x1] }
  0xd9   : > { %v2982_v45 = vadd.f32 %v1846_v52, %v1409_v43  ;;  %v1026_v52 = vrot.slane %v1024_v33, 4  ;;  %v673_v33 = vshll.u32 %v253_v23, 16  ;;  %v662_v43 = vsel %vm2704_vm3, %v657_v16, %v661_v20 }
  0xda   : > { %2541 = vmatmul.msk.bf16.gmra.mxu3 %vm1208_vm0, %v2580_v24  ;;  %2525 = vmatmul.msk.bf16.gmra.mxu1 %vm1208_vm0, %v2564_v25  ;;  %v652_v24 = vsel %vm2704_vm3, %v647_v11, %v651_v49  ;;  %v1127_v55 = vunpack.c.l.b16 %v662_v43  ;;  %v1046_v3 = vsel %vm2704_vm3, %v1041_v46, %v1045_v47  ;;  %v255_v43 = vld [vmem:[%s2690_s24 + $0xb8] sm:$0xf] }
  0xdb   : > { %v1030_v13 = vor.u32 %v1029_v57, %v1026_v52  ;;  %v1126_v44 = vunpack.c.l.b16 %v652_v24  ;;  %v669_v52 = vrot.slane %v667_v30, 5  ;;  %v1057_v57 = vshll.u32 %v285_v36, 16 }
  0xdc   : > { %v1159_v18 = vunpack.c.l.b16 %v1046_v3 }
  0xdd   : > { %v1851_v58 = vpop.f32.mrf.mxu3  ;;  %v1031_v25 = vrot.slane %v1030_v13, 4  ;;  %v670_v11 = vor.u32 %v669_v52, %v666_v56  ;;  %v1059_v13 = vrot.slane %v1057_v57, 5  ;;  %v2582_v52 = vld [vmem:[%s2690_s24 + $0x168] sm:$0xff] }
  0xde   : > { %v2566_v57 = vld [vmem:[%s2690_s24 + $0xa8] sm:$0xff] }
  0xdf   : > { %v1334_v0 = vpop.f32.mrf.mxu0  ;;  %v1773_v10 = vpop.f32.mrf.mxu1  ;;  %v1036_v51 = vsel %vm2704_vm3, %v1031_v25, %v1035_v5  ;;  %v306_v5 = vld [vmem:[%s2690_s24 + $0xb0] sm:$0x1]  ;;  %v671_v28 = vrot.slane %v670_v11, 4 }
  0xe0   : > { %v2991_v9 = vadd.f32 %v1771_v35, %v1334_v0  ;;  %v1411_v14 = vpop.f32.mrf.mxu2  ;;  %v677_v35 = vshrl.u32 %v253_v23, 16  ;;  %v675_v0 = vrot.slane %v673_v33, 5  ;;  %v1158_v6 = vunpack.c.l.b16 %v1036_v51 }
  0xe1   : > { %v2994_v15 = vadd.f32 %v1848_v19, %v1411_v14  ;;  %v284_v19 = vld [vmem:[%s2690_s24 + $0x168] sm:$0xf]  ;;  %v683_v20 = vshll.u32 %v306_v5, 16  ;;  %v1067_v33 = vshll.u32 %v322_v21, 16  ;;  %v287_v5 = vld [vmem:[%s2690_s24 + $0x178] sm:$0xf] }
  0xe2   : > { %2357 = vmatmul.msk.bf16.gmra.mxu0 %vm1208_vm0, %v1176_v59  ;;  %v1048_v50 = vshrl.u32 %v284_v19, 16  ;;  %v1051_v53 = vshll.u32 %v284_v19, 16  ;;  %v1061_v59 = vshrl.u32 %v285_v36, 16  ;;  %v679_v2 = vrot.slane %v677_v35, 4 }
  0xe3   : > { %v1193_v36 = vpack.c.b16 %v1159_v18, %v1158_v6 }
  0xe4   : > { %v1053_v12 = vrot.slane %v1051_v53, 5  ;;  %v1063_v14 = vrot.slane %v1061_v59, 4  ;;  %v680_v16 = vor.u32 %v679_v2, %v675_v0  ;;  %v697_v59 = vshll.u32 %v255_v43, 16 }
  0xe5   : > { %2373 = vmatmul.msk.bf16.gmra.mxu2 %vm1208_vm0, %v1192_v17  ;;  %v1853_v31 = vpop.f32.mrf.mxu3  ;;  %v1177_v17 = vpack.c.b16 %v1127_v55, %v1126_v44  ;;  %v676_v44 = vsel %vm2704_vm3, %v671_v28, %v675_v0  ;;  %v701_v55 = vshrl.u32 %v255_v43, 16  ;;  %v307_v28 = vld [vmem:[%s2690_s24 + $0xbc] sm:$0x1] }
  0xe6   : > { %v1064_v19 = vor.u32 %v1063_v14, %v1059_v13  ;;  %v1128_v3 = vunpack.c.l.b16 %v676_v44  ;;  %v699_v21 = vrot.slane %v697_v59, 5  ;;  %v707_v43 = vshll.u32 %v307_v28, 16  ;;  %v323_v44 = vld [vmem:[%s2690_s24 + $0x17c] sm:$0x1] }
  0xe7   : > { %v1336_v37 = vpop.f32.mrf.mxu0  ;;  %v1776_v49 = vpop.f32.mrf.mxu1 }
  0xe8   : > { %v3008_v48 = vadd.f32 %v1773_v10, %v1336_v37  ;;  %v1414_v54 = vpop.f32.mrf.mxu2  ;;  %v1050_v10 = vrot.slane %v1048_v50, 4  ;;  %v681_v37 = vrot.slane %v680_v16, 4  ;;  %v1065_v47 = vrot.slane %v1064_v19, 4 }
  0xe9   : > { %v3012_v62 = vadd.f32 %v1851_v58, %v1414_v54  ;;  %v286_v54 = vld [vmem:[%s2690_s24 + $0x174] sm:$0xf] }
  0xea   : > { %2542 = vmatmul.msk.bf16.gmra.mxu3 %vm1208_vm0, %v2581_v38  ;;  %2526 = vmatmul.msk.bf16.gmra.mxu1 %vm1208_vm0, %v2565_v42  ;;  %v1054_v30 = vor.u32 %v1053_v12, %v1050_v10  ;;  %v685_v38 = vrot.slane %v683_v20, 5  ;;  %v254_v42 = vld [vmem:[%s2690_s24 + $0xb4] sm:$0xf]  ;;  %v1072_v14 = vshrl.u32 %v286_v54, 16  ;;  %v1075_v20 = vshll.u32 %v286_v54, 16 }
  0xeb   : > { %v688_v50 = vshrl.u32 %v254_v42, 16  ;;  %v691_v53 = vshll.u32 %v254_v42, 16 }
  0xec   : > { %v1055_v46 = vrot.slane %v1054_v30, 4  ;;  %v686_v51 = vsel %vm2704_vm3, %v681_v37, %v685_v38  ;;  %v1077_v37 = vrot.slane %v1075_v20, 5 }
  0xed   : > { %v1856_v58 = vpop.f32.mrf.mxu3  ;;  %v1129_v10 = vunpack.c.l.b16 %v686_v51  ;;  %v690_v18 = vrot.slane %v688_v50, 4  ;;  %v693_v16 = vrot.slane %v691_v53, 5 }
  0xee   : > { %v1060_v11 = vsel %vm2704_vm3, %v1055_v46, %v1059_v13 }
  0xef   : > { %v1339_v22 = vpop.f32.mrf.mxu0  ;;  %v1778_v24 = vpop.f32.mrf.mxu1  ;;  %v1178_v13 = vpack.c.b16 %v1129_v10, %v1128_v3  ;;  %v1160_v30 = vunpack.c.l.b16 %v1060_v11  ;;  %v2583_v10 = vld [vmem:[%s2690_s24 + $0x174] sm:$0xff] }
  0xf0   : > { %v3020_v23 = vadd.f32 %v1776_v49, %v1339_v22  ;;  %v1416_v25 = vpop.f32.mrf.mxu2  ;;  %v1069_v49 = vrot.slane %v1067_v33, 5  ;;  %v703_v22 = vrot.slane %v701_v55, 4  ;;  %v709_v55 = vrot.slane %v707_v43, 5  ;;  %v2567_v11 = vld [vmem:[%s2690_s24 + $0xb4] sm:$0xff] }
  0xf1   : > { %v3022_v35 = vadd.f32 %v1853_v31, %v1416_v25  ;;  %v1085_v25 = vshrl.u32 %v287_v5, 16 }
  0xf2   : > { %2358 = vmatmul.msk.bf16.gmra.mxu0 %vm1208_vm0, %v1177_v17  ;;  %v1070_v12 = vsel %vm2704_vm3, %v1065_v47, %v1069_v49  ;;  %v704_v42 = vor.u32 %v703_v22, %v699_v21 }
  0xf3   : > { %v1161_v33 = vunpack.c.l.b16 %v1070_v12  ;;  %v1087_v47 = vrot.slane %v1085_v25, 4 }
  0xf4   : > { %v705_v59 = vrot.slane %v704_v42, 4 }
  0xf5   : > { %2374 = vmatmul.msk.bf16.gmra.mxu2 %vm1208_vm0, %v1193_v36  ;;  %v1858_v31 = vpop.f32.mrf.mxu3  ;;  %v694_v36 = vor.u32 %v693_v16, %v690_v18  ;;  %v1194_v54 = vpack.c.b16 %v1161_v33, %v1160_v30 }
  0xf6   : > { %v710_v12 = vsel %vm2704_vm3, %v705_v59, %v709_v55 }
  0xf7   : > { %v1341_v56 = vpop.f32.mrf.mxu0  ;;  %v1781_v0 = vpop.f32.mrf.mxu1  ;;  %v1131_v28 = vunpack.c.l.b16 %v710_v12 }
  0xf8   : > { %v3035_v2 = vadd.f32 %v1778_v24, %v1341_v56  ;;  %v1419_v6 = vpop.f32.mrf.mxu2  ;;  %v1081_v24 = vshll.u32 %v287_v5, 16 }
  0xf9   : > { %v3042_v17 = vadd.f32 %v1856_v58, %v1419_v6  ;;  %v1074_v58 = vrot.slane %v1072_v14, 4 }
  0xfa   : > { %2543 = vmatmul.msk.bf16.gmra.mxu3 %vm1208_vm0, %v2582_v52  ;;  %2527 = vmatmul.msk.bf16.gmra.mxu1 %vm1208_vm0, %v2566_v57  ;;  %v1083_v46 = vrot.slane %v1081_v24, 5  ;;  %v1091_v52 = vshll.u32 %v323_v44, 16  ;;  %v695_v57 = vrot.slane %v694_v36, 4 }
  0xfb   : > { %v1078_v56 = vor.u32 %v1077_v37, %v1074_v58 }
  0xfc   : > { %v1088_v3 = vor.u32 %v1087_v47, %v1083_v46  ;;  %v1093_v18 = vrot.slane %v1091_v52, 5 }
  0xfd   : > { %v1861_v19 = vpop.f32.mrf.mxu3 }
  0xfe   : > { %v1089_v14 = vrot.slane %v1088_v3, 4 }
  0xff   : > { %v1344_v38 = vpop.f32.mrf.mxu0  ;;  %v1783_v51 = vpop.f32.mrf.mxu1 }
 0x100   : > { %v3048_v49 = vadd.f32 %v1781_v0, %v1344_v38  ;;  %v1421_v50 = vpop.f32.mrf.mxu2  ;;  %v1079_v0 = vrot.slane %v1078_v56, 4 }
 0x101   : > { %v3050_v53 = vadd.f32 %v1858_v31, %v1421_v50  ;;  %v700_v31 = vsel %vm2704_vm3, %v695_v57, %v699_v21 }
 0x102   : > { %2359 = vmatmul.msk.bf16.gmra.mxu0 %vm1208_vm0, %v1178_v13  ;;  %v1130_v25 = vunpack.c.l.b16 %v700_v31  ;;  %v1084_v21 = vsel %vm2704_vm3, %v1079_v0, %v1083_v46  ;;  %v1094_v13 = vsel %vm2704_vm3, %v1089_v14, %v1093_v18 }
 0x103   : > { %v1162_v36 = vunpack.c.l.b16 %v1084_v21  ;;  %v1163_v58 = vunpack.c.l.b16 %v1094_v13 }
 0x104   : > { %v1179_v33 = vpack.c.b16 %v1131_v28, %v1130_v25 }
 0x105   : > { %2375 = vmatmul.msk.bf16.gmra.mxu2 %vm1208_vm0, %v1194_v54  ;;  %v1863_v5 = vpop.f32.mrf.mxu3  ;;  %v1195_v44 = vpack.c.b16 %v1163_v58, %v1162_v36 }
 0x107   : > { %v1346_v6 = vpop.f32.mrf.mxu0  ;;  %v1786_v20 = vpop.f32.mrf.mxu1 }
 0x108   : > { %v3060_v16 = vadd.f32 %v1783_v51, %v1346_v6  ;;  %v1424_v22 = vpop.f32.mrf.mxu2 }
 0x109   : > { %v3062_v24 = vadd.f32 %v1861_v19, %v1424_v22 }
 0x10a   : > { %2544 = vmatmul.msk.bf16.gmra.mxu3 %vm1208_vm0, %v2583_v10  ;;  %2528 = vmatmul.msk.bf16.gmra.mxu1 %vm1208_vm0, %v2567_v11 }
 0x10d   : > { %v1866_v30 = vpop.f32.mrf.mxu3 }
 0x10f   : > { %v1349_v37 = vpop.f32.mrf.mxu0  ;;  %v1788_v19 = vpop.f32.mrf.mxu1 }
 0x110   : > { %v3070_v38 = vadd.f32 %v1786_v20, %v1349_v37  ;;  %v1426_v42 = vpop.f32.mrf.mxu2 }
 0x111   : > { %v3072_v43 = vadd.f32 %v1863_v5, %v1426_v42 }
 0x112   : > { %2360 = vmatmul.msk.bf16.gmra.mxu0 %vm1208_vm0, %v1179_v33 }
 0x115   : > { %2376 = vmatmul.msk.bf16.gmra.mxu2 %vm1208_vm0, %v1195_v44  ;;  %v1868_v46 = vpop.f32.mrf.mxu3 }
 0x117   : > { %v1351_v47 = vpop.f32.mrf.mxu0  ;;  %v1791_v51 = vpop.f32.mrf.mxu1 }
 0x118   : > { %v3076_v32 = vadd.f32 %v1788_v19, %v1351_v47  ;;  %v1429_v50 = vpop.f32.mrf.mxu2 }
 0x119   : > { %v3078_v54 = vadd.f32 %v1866_v30, %v1429_v50 }
 0x11d   : > { %v1871_v56 = vpop.f32.mrf.mxu3 }
 0x11f   : > { %v1354_v52 = vpop.f32.mrf.mxu0  ;;  %v1793_v59 = vpop.f32.mrf.mxu1 }
 0x120   : > { %v3080_v57 = vadd.f32 %v1791_v51, %v1354_v52  ;;  %v1431_v55 = vpop.f32.mrf.mxu2 }
 0x121   : > { %v3082_v3 = vadd.f32 %v1868_v46, %v1431_v55 }
 0x125   : > { %v1873_v5 = vpop.f32.mrf.mxu3 }
 0x127   : > { %v1356_v0 = vpop.f32.mrf.mxu0  ;;  %v1796_v10 = vpop.f32.mrf.mxu1 }
 0x128   : > { %v3084_v6 = vadd.f32 %v1793_v59, %v1356_v0  ;;  %v1434_v11 = vpop.f32.mrf.mxu2 }
 0x129   : > { %v3086_v31 = vadd.f32 %v1871_v56, %v1434_v11 }
 0x12d   : > { %v1876_v12 = vpop.f32.mrf.mxu3 }
 0x12f   : > { %v1359_v14 = vpop.f32.mrf.mxu0  ;;  %v1798_v20 = vpop.f32.mrf.mxu1 }
 0x130   : > { %v3088_v18 = vadd.f32 %v1796_v10, %v1359_v14  ;;  %v1436_v22 = vpop.f32.mrf.mxu2 }
 0x131   : > { %v3090_v25 = vadd.f32 %v1873_v5, %v1436_v22 }
 0x133   : > { %3936 = vst [vmem:[#allocation2_spill] sm:$0xff] %v3090_v25 }
 0x135   : > { %v1878_v28 = vpop.f32.mrf.mxu3 }
 0x137   : > { %v1361_v21 = vpop.f32.mrf.mxu0  ;;  %v1801_v30 = vpop.f32.mrf.mxu1 }
 0x138   : > { %v3092_v13 = vadd.f32 %v1798_v20, %v1361_v21  ;;  %v1439_v33 = vpop.f32.mrf.mxu2 }
 0x139   : > { %v3094_v36 = vadd.f32 %v1876_v12, %v1439_v33 }
 0x13b   : > { %3937 = vst [vmem:[#allocation3_spill] sm:$0xff] %v3094_v36 }
 0x13d   : > { %v1881_v58 = vpop.f32.mrf.mxu3 }
 0x13f   : > { %v1364_v37 = vpop.f32.mrf.mxu0  ;;  %v1803_v42 = vpop.f32.mrf.mxu1 }
 0x140   : > { %v3096_v19 = vadd.f32 %v1801_v30, %v1364_v37  ;;  %v1441_v44 = vpop.f32.mrf.mxu2 }
 0x141   : > { %v3098_v46 = vadd.f32 %v1878_v28, %v1441_v44 }
 0x143   : > { %3938 = vst [vmem:[#allocation4_spill] sm:$0xff] %v3098_v46 }
 0x145   : > { %v1883_v47 = vpop.f32.mrf.mxu3 }
 0x147   : > { %v1366_v51 = vpop.f32.mrf.mxu0  ;;  %v1806_v56 = vpop.f32.mrf.mxu1 }
 0x148   : > { %v3100_v50 = vadd.f32 %v1803_v42, %v1366_v51  ;;  %v1444_v52 = vpop.f32.mrf.mxu2 }
 0x149   : > { %v3102_v59 = vadd.f32 %v1881_v58, %v1444_v52 }
 0x14b   : > { %3939 = vst [vmem:[#allocation5_spill] sm:$0xff] %v3102_v59 }
 0x14d   : > { %v1886_v55 = vpop.f32.mrf.mxu3 }
 0x14f   : > { %v1369_v5 = vpop.f32.mrf.mxu0  ;;  %v1808_v10 = vpop.f32.mrf.mxu1 }
 0x150   : > { %v3104_v0 = vadd.f32 %v1806_v56, %v1369_v5  ;;  %v1446_v11 = vpop.f32.mrf.mxu2 }
 0x151   : > { %v3106_v12 = vadd.f32 %v1883_v47, %v1446_v11 }
 0x153   : > { %3940 = vst [vmem:[#allocation6_spill] sm:$0xff] %v3106_v12 }
 0x155   : > { %v1888_v14 = vpop.f32.mrf.mxu3 }
 0x157   : > { %v1371_v20 = vpop.f32.mrf.mxu0  ;;  %v1811_v28 = vpop.f32.mrf.mxu1 }
 0x158   : > { %v3108_v22 = vadd.f32 %v1808_v10, %v1371_v20  ;;  %v1449_v21 = vpop.f32.mrf.mxu2 }
 0x159   : > { %v3110_v30 = vadd.f32 %v1886_v55, %v1449_v21 }
 0x15b   : > { %3941 = vst [vmem:[#allocation7_spill] sm:$0xff] %v3110_v30 }
 0x15d   : > { %v1891_v33 = vpop.f32.mrf.mxu3 }
 0x15f   : > { %v1374_v37 = vpop.f32.mrf.mxu0  ;;  %v1813_v42 = vpop.f32.mrf.mxu1 }
 0x160   : > { %v3112_v58 = vadd.f32 %v1811_v28, %v1374_v37  ;;  %v1451_v44 = vpop.f32.mrf.mxu2 }
 0x161   : > { %v3114_v51 = vadd.f32 %v1888_v14, %v1451_v44 }
 0x163   : > { %3942 = vst [vmem:[#allocation8_spill] sm:$0xff] %v3114_v51 }
 0x165   : > { %v1893_v56 = vpop.f32.mrf.mxu3 }
 0x167   : > { %v1376_v52 = vpop.f32.mrf.mxu0  ;;  %v1816_v5 = vpop.f32.mrf.mxu1 }
 0x168   : > { %v3116_v47 = vadd.f32 %v1813_v42, %v1376_v52  ;;  %v1454_v11 = vpop.f32.mrf.mxu2 }
 0x169   : > { %v3118_v10 = vadd.f32 %v1891_v33, %v1454_v11 }
 0x16b   : > { %3943 = vst [vmem:[#allocation9_spill] sm:$0xff] %v3118_v10 }
 0x16d   : > { %v1896_v20 = vpop.f32.mrf.mxu3 }
 0x16f   : > { %v1379_v12 = vpop.f32.mrf.mxu0  ;;  %v1818_v21 = vpop.f32.mrf.mxu1 }
 0x170   : > { %v3120_v55 = vadd.f32 %v1816_v5, %v1379_v12  ;;  %v1456_v30 = vpop.f32.mrf.mxu2 }
 0x171   : > { %v3122_v28 = vadd.f32 %v1893_v56, %v1456_v30 }
 0x173   : > { %3944 = vst [vmem:[#allocation10_spill] sm:$0xff] %v3122_v28 }
 0x175   : > { %v1898_v14 = vpop.f32.mrf.mxu3 }
 0x177   : > { %v1381_v37 = vpop.f32.mrf.mxu0  ;;  %v1821_v51 = vpop.f32.mrf.mxu1 }
 0x178   : > { %v3124_v59 = vadd.f32 %v1818_v21, %v1381_v37  ;;  %v1459_v44 = vpop.f32.mrf.mxu2 }
 0x179   : > { %v3126_v42 = vadd.f32 %v1896_v20, %v1459_v44 }
 0x17b   : > { %3945 = vst [vmem:[#allocation11_spill] sm:$0xff] %v3126_v42 }
 0x17d   : > { %v1901_v12 = vpop.f32.mrf.mxu3 }
 0x17f   : > { %v1384_v52 = vpop.f32.mrf.mxu0  ;;  %v1823_v5 = vpop.f32.mrf.mxu1 }
 0x180   : > { %v3128_v46 = vadd.f32 %v1821_v51, %v1384_v52  ;;  %v1461_v33 = vpop.f32.mrf.mxu2 }
 0x181   : > { %v3130_v11 = vadd.f32 %v1898_v14, %v1461_v33 }
 0x183   : > { %3946 = vst [vmem:[#allocation12_spill] sm:$0xff] %v3130_v11 }
 0x185   : > { %v1903_v21 = vpop.f32.mrf.mxu3 }
 0x187   : > { %v1386_v10 = vpop.f32.mrf.mxu0  ;;  %v1826_v37 = vpop.f32.mrf.mxu1 }
 0x188   : > { %v3132_v36 = vadd.f32 %v1823_v5, %v1386_v10  ;;  %v1464_v30 = vpop.f32.mrf.mxu2 }
 0x189   : > { %v3134_v56 = vadd.f32 %v1901_v12, %v1464_v30 }
 0x18d   : > { %v1906_v51 = vpop.f32.mrf.mxu3 }
 0x18f   : > { %v1389_v28 = vpop.f32.mrf.mxu0  ;;  %v1828_v52 = vpop.f32.mrf.mxu1 }
 0x190   : > { %v3136_v25 = vadd.f32 %v1826_v37, %v1389_v28  ;;  %v1466_v20 = vpop.f32.mrf.mxu2 }
 0x191   : > { %v3138_v44 = vadd.f32 %v1903_v21, %v1466_v20 }
 0x195   : > { %v1908_v10 = vpop.f32.mrf.mxu3 }
 0x197   : > { %v1391_v14 = vpop.f32.mrf.mxu0 }
 0x198   : > { %v3140_v33 = vadd.f32 %v1828_v52, %v1391_v14  ;;  %v1469_v11 = vpop.f32.mrf.mxu2 }
 0x199   : > { %v3142_v42 = vadd.f32 %v1906_v51, %v1469_v11 }
 0x19d   : > { %1914 = sbr.rel (%p2545_p5) target bundleno = 485 (0x1e5), region = 36 }
 0x1a0   : > { %v1471_v5 = vpop.f32.mrf.mxu2 }
 0x1a1   : > { %v3144_v12 = vadd.f32 %v1908_v10, %v1471_v5 }
 0x1a2   : > { %v3150_v28 = vld [vmem:[%s3932_s2] ss:$0 sm:$0xff] }
 0x1a3   : > { %v1919_v30 = vadd.f32 %v3150_v28, %v2882_v4  ;;  %v1920_v21 = vadd.f32 %v3150_v28, %v2895_v29  ;;  %v1921_v11 = vadd.f32 %v3150_v28, %v2908_v61  ;;  %v1922_v37 = vadd.f32 %v3150_v28, %v2924_v27 }
 0x1a4   : > { %v1923_v20 = vadd.f32 %v3150_v28, %v2936_v60  ;;  %v1924_v51 = vadd.f32 %v3150_v28, %v2952_v26  ;;  %v1925_v52 = vadd.f32 %v3150_v28, %v2964_v63  ;;  %v1926_v14 = vadd.f32 %v3150_v28, %v2979_v34 }
 0x1a5   : > { %1983 = vst [vmem:[%s3933_s3] sm:$0xff] %v1919_v30  ;;  %v1927_v10 = vadd.f32 %v3150_v28, %v2991_v9  ;;  %v1928_v5 = vadd.f32 %v3150_v28, %v3008_v48  ;;  %v1929_v30 = vadd.f32 %v3150_v28, %v3020_v23 }
 0x1a6   : > { %1984 = vst [vmem:[%s3933_s3 + $0x8] sm:$0xff] %v1920_v21  ;;  %v1930_v21 = vadd.f32 %v3150_v28, %v3035_v2 }
 0x1a7   : > { %1985 = vst [vmem:[%s3933_s3 + $0x10] sm:$0xff] %v1921_v11  ;;  %v1931_v11 = vadd.f32 %v3150_v28, %v3048_v49 }
 0x1a8   : > { %1986 = vst [vmem:[%s3933_s3 + $0x18] sm:$0xff] %v1922_v37  ;;  %v1932_v37 = vadd.f32 %v3150_v28, %v3060_v16 }
 0x1a9   : > { %1987 = vst [vmem:[%s3933_s3 + $0x20] sm:$0xff] %v1923_v20  ;;  %v1933_v20 = vadd.f32 %v3150_v28, %v3070_v38 }
 0x1aa   : > { %1988 = vst [vmem:[%s3933_s3 + $0x28] sm:$0xff] %v1924_v51  ;;  %v1934_v51 = vadd.f32 %v3150_v28, %v3076_v32 }
 0x1ab   : > { %1989 = vst [vmem:[%s3933_s3 + $0x30] sm:$0xff] %v1925_v52  ;;  %v1935_v52 = vadd.f32 %v3150_v28, %v3080_v57 }
 0x1ac   : > { %1990 = vst [vmem:[%s3933_s3 + $0x38] sm:$0xff] %v1926_v14  ;;  %v1936_v14 = vadd.f32 %v3150_v28, %v3084_v6 }
 0x1ad   : > { %1991 = vst [vmem:[%s3933_s3 + $0x40] sm:$0xff] %v1927_v10  ;;  %v1937_v10 = vadd.f32 %v3150_v28, %v3088_v18 }
 0x1ae   : > { %1992 = vst [vmem:[%s3933_s3 + $0x48] sm:$0xff] %v1928_v5  ;;  %v1938_v5 = vadd.f32 %v3150_v28, %v3092_v13 }
 0x1af   : > { %1993 = vst [vmem:[%s3933_s3 + $0x50] sm:$0xff] %v1929_v30  ;;  %v1939_v30 = vadd.f32 %v3150_v28, %v3096_v19 }
 0x1b0   : > { %1994 = vst [vmem:[%s3933_s3 + $0x58] sm:$0xff] %v1930_v21  ;;  %v1940_v21 = vadd.f32 %v3150_v28, %v3100_v50 }
 0x1b1   : > { %1995 = vst [vmem:[%s3933_s3 + $0x60] sm:$0xff] %v1931_v11  ;;  %v1941_v11 = vadd.f32 %v3150_v28, %v3104_v0 }
 0x1b2   : > { %1996 = vst [vmem:[%s3933_s3 + $0x68] sm:$0xff] %v1932_v37  ;;  %v1942_v37 = vadd.f32 %v3150_v28, %v3108_v22 }
 0x1b3   : > { %1997 = vst [vmem:[%s3933_s3 + $0x70] sm:$0xff] %v1933_v20  ;;  %v1943_v20 = vadd.f32 %v3150_v28, %v3112_v58 }
 0x1b4   : > { %1998 = vst [vmem:[%s3933_s3 + $0x78] sm:$0xff] %v1934_v51  ;;  %v1944_v51 = vadd.f32 %v3150_v28, %v3116_v47 }
 0x1b5   : > { %1999 = vst [vmem:[%s3933_s3 + $0x80] sm:$0xff] %v1935_v52  ;;  %v1945_v52 = vadd.f32 %v3150_v28, %v3120_v55 }
 0x1b6   : > { %2000 = vst [vmem:[%s3933_s3 + $0x88] sm:$0xff] %v1936_v14  ;;  %v1946_v14 = vadd.f32 %v3150_v28, %v3124_v59 }
 0x1b7   : > { %2001 = vst [vmem:[%s3933_s3 + $0x90] sm:$0xff] %v1937_v10  ;;  %v1947_v10 = vadd.f32 %v3150_v28, %v3128_v46 }
 0x1b8   : > { %2002 = vst [vmem:[%s3933_s3 + $0x98] sm:$0xff] %v1938_v5  ;;  %v1948_v5 = vadd.f32 %v3150_v28, %v3132_v36 }
 0x1b9   : > { %2003 = vst [vmem:[%s3933_s3 + $0xa0] sm:$0xff] %v1939_v30  ;;  %v1949_v30 = vadd.f32 %v3150_v28, %v3136_v25 }
 0x1ba   : > { %2004 = vst [vmem:[%s3933_s3 + $0xa8] sm:$0xff] %v1940_v21  ;;  %v1950_v21 = vadd.f32 %v3150_v28, %v3140_v33 }
 0x1bb   : > { %2005 = vst [vmem:[%s3933_s3 + $0xb0] sm:$0xff] %v1941_v11  ;;  %v1951_v11 = vadd.f32 %v3150_v28, %v2902_v39 }
 0x1bc   : > { %2006 = vst [vmem:[%s3933_s3 + $0xb8] sm:$0xff] %v1942_v37  ;;  %v1952_v37 = vadd.f32 %v3150_v28, %v2911_v1 }
 0x1bd   : > { %2007 = vst [vmem:[%s3933_s3 + $0xc0] sm:$0xff] %v1943_v20  ;;  %v1953_v20 = vadd.f32 %v3150_v28, %v2926_v40 }
 0x1be   : > { %2008 = vst [vmem:[%s3933_s3 + $0xc8] sm:$0xff] %v1944_v51  ;;  %v1954_v51 = vadd.f32 %v3150_v28, %v2938_v7 }
 0x1bf   : > { %2009 = vst [vmem:[%s3933_s3 + $0xd0] sm:$0xff] %v1945_v52  ;;  %v1955_v52 = vadd.f32 %v3150_v28, %v2958_v41 }
 0x1c0   : > { %2010 = vst [vmem:[%s3933_s3 + $0xd8] sm:$0xff] %v1946_v14  ;;  %v1956_v14 = vadd.f32 %v3150_v28, %v2967_v8 }
 0x1c1   : > { %2011 = vst [vmem:[%s3933_s3 + $0xe0] sm:$0xff] %v1947_v10  ;;  %v1957_v10 = vadd.f32 %v3150_v28, %v2982_v45 }
 0x1c2   : > { %2012 = vst [vmem:[%s3933_s3 + $0xe8] sm:$0xff] %v1948_v5  ;;  %v1958_v5 = vadd.f32 %v3150_v28, %v2994_v15 }
 0x1c3   : > { %2013 = vst [vmem:[%s3933_s3 + $0xf0] sm:$0xff] %v1949_v30  ;;  %v1959_v30 = vadd.f32 %v3150_v28, %v3012_v62 }
 0x1c4   : > { %2014 = vst [vmem:[%s3933_s3 + $0xf8] sm:$0xff] %v1950_v21  ;;  %v1960_v21 = vadd.f32 %v3150_v28, %v3022_v35 }
 0x1c5   : > { %2015 = vst [vmem:[%s3933_s3 + $0x100] sm:$0xff] %v1951_v11  ;;  %v1961_v11 = vadd.f32 %v3150_v28, %v3042_v17 }
 0x1c6   : > { %2016 = vst [vmem:[%s3933_s3 + $0x108] sm:$0xff] %v1952_v37  ;;  %v1962_v37 = vadd.f32 %v3150_v28, %v3050_v53 }
 0x1c7   : > { %2017 = vst [vmem:[%s3933_s3 + $0x110] sm:$0xff] %v1953_v20  ;;  %v1963_v20 = vadd.f32 %v3150_v28, %v3062_v24 }
 0x1c8   : > { %2018 = vst [vmem:[%s3933_s3 + $0x118] sm:$0xff] %v1954_v51  ;;  %v1964_v51 = vadd.f32 %v3150_v28, %v3072_v43 }
 0x1c9   : > { %2019 = vst [vmem:[%s3933_s3 + $0x120] sm:$0xff] %v1955_v52  ;;  %v1965_v52 = vadd.f32 %v3150_v28, %v3078_v54 }
 0x1ca   : > { %2020 = vst [vmem:[%s3933_s3 + $0x128] sm:$0xff] %v1956_v14  ;;  %v1966_v14 = vadd.f32 %v3150_v28, %v3082_v3 }
 0x1cb   : > { %2021 = vst [vmem:[%s3933_s3 + $0x130] sm:$0xff] %v1957_v10  ;;  %v1967_v10 = vadd.f32 %v3150_v28, %v3086_v31 }
 0x1cc   : > { %2022 = vst [vmem:[%s3933_s3 + $0x138] sm:$0xff] %v1958_v5  ;;  %v3947_v5 = vld [vmem:[#allocation2_spill] sm:$0xff] }
 0x1cd   : > { %2023 = vst [vmem:[%s3933_s3 + $0x140] sm:$0xff] %v1959_v30  ;;  %v1968_v30 = vadd.f32 %v3150_v28, %v3947_v5 }
 0x1ce   : > { %2024 = vst [vmem:[%s3933_s3 + $0x148] sm:$0xff] %v1960_v21  ;;  %v3948_v21 = vld [vmem:[#allocation3_spill] sm:$0xff] }
 0x1cf   : > { %2025 = vst [vmem:[%s3933_s3 + $0x150] sm:$0xff] %v1961_v11  ;;  %v1969_v11 = vadd.f32 %v3150_v28, %v3948_v21 }
 0x1d0   : > { %2026 = vst [vmem:[%s3933_s3 + $0x158] sm:$0xff] %v1962_v37  ;;  %v3949_v37 = vld [vmem:[#allocation4_spill] sm:$0xff] }
 0x1d1   : > { %2027 = vst [vmem:[%s3933_s3 + $0x160] sm:$0xff] %v1963_v20  ;;  %v1970_v20 = vadd.f32 %v3150_v28, %v3949_v37 }
 0x1d2   : > { %2028 = vst [vmem:[%s3933_s3 + $0x168] sm:$0xff] %v1964_v51  ;;  %v3950_v51 = vld [vmem:[#allocation5_spill] sm:$0xff] }
 0x1d3   : > { %2029 = vst [vmem:[%s3933_s3 + $0x170] sm:$0xff] %v1965_v52  ;;  %v1971_v5 = vadd.f32 %v3150_v28, %v3950_v51  ;;  %v3951_v52 = vld [vmem:[#allocation6_spill] sm:$0xff] }
 0x1d4   : > { %2030 = vst [vmem:[%s3933_s3 + $0x178] sm:$0xff] %v1966_v14  ;;  %v1972_v21 = vadd.f32 %v3150_v28, %v3951_v52  ;;  %v3952_v14 = vld [vmem:[#allocation7_spill] sm:$0xff] }
 0x1d5   : > { %2031 = vst [vmem:[%s3933_s3 + $0x180] sm:$0xff] %v1967_v10  ;;  %v1973_v37 = vadd.f32 %v3150_v28, %v3952_v14  ;;  %v3953_v10 = vld [vmem:[#allocation8_spill] sm:$0xff] }
 0x1d6   : > { %2032 = vst [vmem:[%s3933_s3 + $0x188] sm:$0xff] %v1968_v30  ;;  %v1974_v51 = vadd.f32 %v3150_v28, %v3953_v10  ;;  %v3954_v30 = vld [vmem:[#allocation9_spill] sm:$0xff] }
 0x1d7   : > { %2033 = vst [vmem:[%s3933_s3 + $0x190] sm:$0xff] %v1969_v11  ;;  %v1975_v52 = vadd.f32 %v3150_v28, %v3954_v30  ;;  %v3955_v11 = vld [vmem:[#allocation10_spill] sm:$0xff] }
 0x1d8   : > { %2034 = vst [vmem:[%s3933_s3 + $0x198] sm:$0xff] %v1970_v20  ;;  %v1976_v14 = vadd.f32 %v3150_v28, %v3955_v11  ;;  %v3956_v20 = vld [vmem:[#allocation11_spill] sm:$0xff] }
 0x1d9   : > { %2035 = vst [vmem:[%s3933_s3 + $0x1a0] sm:$0xff] %v1971_v5  ;;  %v1977_v10 = vadd.f32 %v3150_v28, %v3956_v20  ;;  %v3957_v5 = vld [vmem:[#allocation12_spill] sm:$0xff] }
 0x1da   : > { %2036 = vst [vmem:[%s3933_s3 + $0x1a8] sm:$0xff] %v1972_v21  ;;  %v1978_v30 = vadd.f32 %v3150_v28, %v3957_v5  ;;  %v1979_v21 = vadd.f32 %v3150_v28, %v3134_v56 }
 0x1db   : > { %2037 = vst [vmem:[%s3933_s3 + $0x1b0] sm:$0xff] %v1973_v37  ;;  %v1980_v37 = vadd.f32 %v3150_v28, %v3138_v44 }
 0x1dc   : > { %2038 = vst [vmem:[%s3933_s3 + $0x1b8] sm:$0xff] %v1974_v51  ;;  %v1981_v51 = vadd.f32 %v3150_v28, %v3142_v42 }
 0x1dd   : > { %2039 = vst [vmem:[%s3933_s3 + $0x1c0] sm:$0xff] %v1975_v52  ;;  %v1982_v52 = vadd.f32 %v3150_v28, %v3144_v12 }
 0x1de   : > { %2040 = vst [vmem:[%s3933_s3 + $0x1c8] sm:$0xff] %v1976_v14 }
 0x1df   : > { %2041 = vst [vmem:[%s3933_s3 + $0x1d0] sm:$0xff] %v1977_v10 }
 0x1e0   : > { %2042 = vst [vmem:[%s3933_s3 + $0x1d8] sm:$0xff] %v1978_v30 }
 0x1e1   : > { %2043 = vst [vmem:[%s3933_s3 + $0x1e0] sm:$0xff] %v1979_v21 }
 0x1e2   : > { %2044 = vst [vmem:[%s3933_s3 + $0x1e8] sm:$0xff] %v1980_v37 }
 0x1e3   : > { %2045 = vst [vmem:[%s3933_s3 + $0x1f0] sm:$0xff] %v1981_v51 }
 0x1e4   : > { %2046 = vst [vmem:[%s3933_s3 + $0x1f8] sm:$0xff] %v1982_v52 }
 0x1e5 PF: > { %p2546_p6 = scmp.le.s32.totalorder %s2632_s12, 0 }
 0x1e7   : > { %2050 = sbr.rel (%p2546_p6) target bundleno = 559 (0x22f), region = 40 }
 0x1ec   : > { %v2051_v28 = vld [vmem:[%s3933_s3] sm:$0xff]  ;;  %v2052_v11 = vld [vmem:[%s3933_s3 + $0x8] sm:$0xff]  ;;  %v2053_v14 = vld [vmem:[%s3933_s3 + $0x10] sm:$0xff] }
 0x1ed   : > { %v2115_v20 = vadd.f32 %v2051_v28, %v2882_v4  ;;  %v2116_v10 = vadd.f32 %v2052_v11, %v2895_v29  ;;  %v2117_v5 = vadd.f32 %v2053_v14, %v2908_v61  ;;  %v2054_v30 = vld [vmem:[%s3933_s3 + $0x18] sm:$0xff]  ;;  %v2055_v21 = vld [vmem:[%s3933_s3 + $0x20] sm:$0xff]  ;;  %v2056_v37 = vld [vmem:[%s3933_s3 + $0x28] sm:$0xff] }
 0x1ee   : > { %v2118_v51 = vadd.f32 %v2054_v30, %v2924_v27  ;;  %v2057_v4 = vld [vmem:[%s3933_s3 + $0x30] sm:$0xff]  ;;  %v2119_v29 = vadd.f32 %v2055_v21, %v2936_v60  ;;  %v2058_v61 = vld [vmem:[%s3933_s3 + $0x38] sm:$0xff]  ;;  %v2120_v27 = vadd.f32 %v2056_v37, %v2952_v26  ;;  %v2059_v52 = vld [vmem:[%s3933_s3 + $0x40] sm:$0xff] }
 0x1ef   : > { %2179 = vst [vmem:[%s3933_s3] sm:$0xff] %v2115_v20  ;;  %v2121_v60 = vadd.f32 %v2057_v4, %v2964_v63  ;;  %v2060_v28 = vld [vmem:[%s3933_s3 + $0x48] sm:$0xff]  ;;  %v2122_v26 = vadd.f32 %v2058_v61, %v2979_v34  ;;  %v2061_v11 = vld [vmem:[%s3933_s3 + $0x50] sm:$0xff]  ;;  %v2123_v63 = vadd.f32 %v2059_v52, %v2991_v9  ;;  %v2062_v14 = vld [vmem:[%s3933_s3 + $0x58] sm:$0xff] }
 0x1f0   : > { %2180 = vst [vmem:[%s3933_s3 + $0x8] sm:$0xff] %v2116_v10  ;;  %v2124_v34 = vadd.f32 %v2060_v28, %v3008_v48  ;;  %v2063_v20 = vld [vmem:[%s3933_s3 + $0x60] sm:$0xff]  ;;  %v2125_v9 = vadd.f32 %v2061_v11, %v3020_v23  ;;  %v2064_v10 = vld [vmem:[%s3933_s3 + $0x68] sm:$0xff]  ;;  %v2126_v48 = vadd.f32 %v2062_v14, %v3035_v2  ;;  %v2066_v30 = vld [vmem:[%s3933_s3 + $0x78] sm:$0xff] }
 0x1f1   : > { %2181 = vst [vmem:[%s3933_s3 + $0x10] sm:$0xff] %v2117_v5  ;;  %v2065_v5 = vld [vmem:[%s3933_s3 + $0x70] sm:$0xff]  ;;  %v2127_v23 = vadd.f32 %v2063_v20, %v3048_v49  ;;  %v2128_v2 = vadd.f32 %v2064_v10, %v3060_v16  ;;  %v2067_v21 = vld [vmem:[%s3933_s3 + $0x80] sm:$0xff]  ;;  %v2068_v37 = vld [vmem:[%s3933_s3 + $0x88] sm:$0xff]  ;;  %v2130_v16 = vadd.f32 %v2066_v30, %v3076_v32 }
 0x1f2   : > { %2182 = vst [vmem:[%s3933_s3 + $0x18] sm:$0xff] %v2118_v51  ;;  %v2129_v49 = vadd.f32 %v2065_v5, %v3070_v38  ;;  %v2069_v51 = vld [vmem:[%s3933_s3 + $0x90] sm:$0xff]  ;;  %v2131_v38 = vadd.f32 %v2067_v21, %v3080_v57  ;;  %v2070_v4 = vld [vmem:[%s3933_s3 + $0x98] sm:$0xff]  ;;  %v2132_v32 = vadd.f32 %v2068_v37, %v3084_v6  ;;  %v2072_v61 = vld [vmem:[%s3933_s3 + $0xa8] sm:$0xff] }
 0x1f3   : > { %2183 = vst [vmem:[%s3933_s3 + $0x20] sm:$0xff] %v2119_v29  ;;  %v2071_v29 = vld [vmem:[%s3933_s3 + $0xa0] sm:$0xff]  ;;  %v2133_v57 = vadd.f32 %v2069_v51, %v3088_v18  ;;  %v2134_v6 = vadd.f32 %v2070_v4, %v3092_v13  ;;  %v2074_v52 = vld [vmem:[%s3933_s3 + $0xb8] sm:$0xff]  ;;  %v2136_v13 = vadd.f32 %v2072_v61, %v3100_v50  ;;  %v2076_v28 = vld [vmem:[%s3933_s3 + $0xc8] sm:$0xff] }
 0x1f4   : > { %2184 = vst [vmem:[%s3933_s3 + $0x28] sm:$0xff] %v2120_v27  ;;  %v2073_v27 = vld [vmem:[%s3933_s3 + $0xb0] sm:$0xff]  ;;  %v2135_v18 = vadd.f32 %v2071_v29, %v3096_v19  ;;  %v2138_v50 = vadd.f32 %v2074_v52, %v3108_v22  ;;  %v2078_v11 = vld [vmem:[%s3933_s3 + $0xd8] sm:$0xff]  ;;  %v2140_v22 = vadd.f32 %v2076_v28, %v3116_v47  ;;  %v2080_v14 = vld [vmem:[%s3933_s3 + $0xe8] sm:$0xff] }
 0x1f5   : > { %2185 = vst [vmem:[%s3933_s3 + $0x30] sm:$0xff] %v2121_v60  ;;  %v2075_v60 = vld [vmem:[%s3933_s3 + $0xc0] sm:$0xff]  ;;  %v2137_v19 = vadd.f32 %v2073_v27, %v3104_v0  ;;  %v2142_v47 = vadd.f32 %v2078_v11, %v3124_v59  ;;  %v2082_v20 = vld [vmem:[%s3933_s3 + $0xf8] sm:$0xff]  ;;  %v2144_v59 = vadd.f32 %v2080_v14, %v3132_v36  ;;  %v2084_v10 = vld [vmem:[%s3933_s3 + $0x108] sm:$0xff] }
 0x1f6   : > { %2186 = vst [vmem:[%s3933_s3 + $0x38] sm:$0xff] %v2122_v26  ;;  %v2077_v26 = vld [vmem:[%s3933_s3 + $0xd0] sm:$0xff]  ;;  %v2139_v0 = vadd.f32 %v2075_v60, %v3112_v58  ;;  %v2146_v36 = vadd.f32 %v2082_v20, %v3140_v33  ;;  %v2086_v5 = vld [vmem:[%s3933_s3 + $0x118] sm:$0xff]  ;;  %v2148_v33 = vadd.f32 %v2084_v10, %v2911_v1  ;;  %v2088_v30 = vld [vmem:[%s3933_s3 + $0x128] sm:$0xff] }
 0x1f7   : > { %2187 = vst [vmem:[%s3933_s3 + $0x40] sm:$0xff] %v2123_v63  ;;  %v2079_v63 = vld [vmem:[%s3933_s3 + $0xe0] sm:$0xff]  ;;  %v2141_v58 = vadd.f32 %v2077_v26, %v3120_v55  ;;  %v2150_v1 = vadd.f32 %v2086_v5, %v2938_v7  ;;  %v2090_v21 = vld [vmem:[%s3933_s3 + $0x138] sm:$0xff]  ;;  %v2152_v7 = vadd.f32 %v2088_v30, %v2967_v8  ;;  %v2092_v37 = vld [vmem:[%s3933_s3 + $0x148] sm:$0xff] }
 0x1f8   : > { %2188 = vst [vmem:[%s3933_s3 + $0x48] sm:$0xff] %v2124_v34  ;;  %v2081_v34 = vld [vmem:[%s3933_s3 + $0xf0] sm:$0xff]  ;;  %v2143_v55 = vadd.f32 %v2079_v63, %v3128_v46  ;;  %v2154_v8 = vadd.f32 %v2090_v21, %v2994_v15  ;;  %v2094_v51 = vld [vmem:[%s3933_s3 + $0x158] sm:$0xff]  ;;  %v2156_v15 = vadd.f32 %v2092_v37, %v3022_v35  ;;  %v2096_v4 = vld [vmem:[%s3933_s3 + $0x168] sm:$0xff] }
 0x1f9   : > { %2189 = vst [vmem:[%s3933_s3 + $0x50] sm:$0xff] %v2125_v9  ;;  %v2083_v9 = vld [vmem:[%s3933_s3 + $0x100] sm:$0xff]  ;;  %v2145_v46 = vadd.f32 %v2081_v34, %v3136_v25  ;;  %v2158_v35 = vadd.f32 %v2094_v51, %v3050_v53  ;;  %v2098_v29 = vld [vmem:[%s3933_s3 + $0x178] sm:$0xff]  ;;  %v2160_v53 = vadd.f32 %v2096_v4, %v3072_v43  ;;  %v2100_v61 = vld [vmem:[%s3933_s3 + $0x188] sm:$0xff] }
 0x1fa   : > { %2190 = vst [vmem:[%s3933_s3 + $0x58] sm:$0xff] %v2126_v48  ;;  %v2085_v48 = vld [vmem:[%s3933_s3 + $0x110] sm:$0xff]  ;;  %v2147_v25 = vadd.f32 %v2083_v9, %v2902_v39  ;;  %v2162_v43 = vadd.f32 %v2098_v29, %v3082_v3  ;;  %v2102_v27 = vld [vmem:[%s3933_s3 + $0x198] sm:$0xff]  ;;  %v2103_v52 = vld [vmem:[%s3933_s3 + $0x1a0] sm:$0xff] }
 0x1fb   : > { %2191 = vst [vmem:[%s3933_s3 + $0x60] sm:$0xff] %v2127_v23  ;;  %v2087_v23 = vld [vmem:[%s3933_s3 + $0x120] sm:$0xff]  ;;  %v2149_v39 = vadd.f32 %v2085_v48, %v2926_v40  ;;  %v2104_v60 = vld [vmem:[%s3933_s3 + $0x1a8] sm:$0xff]  ;;  %v3961_v26 = vld [vmem:[#allocation5_spill] sm:$0xff] }
 0x1fc   : > { %2192 = vst [vmem:[%s3933_s3 + $0x68] sm:$0xff] %v2128_v2  ;;  %v2089_v2 = vld [vmem:[%s3933_s3 + $0x130] sm:$0xff]  ;;  %v2151_v40 = vadd.f32 %v2087_v23, %v2958_v41  ;;  %v2106_v11 = vld [vmem:[%s3933_s3 + $0x1b8] sm:$0xff]  ;;  %v3963_v14 = vld [vmem:[#allocation7_spill] sm:$0xff] }
 0x1fd   : > { %2193 = vst [vmem:[%s3933_s3 + $0x70] sm:$0xff] %v2129_v49  ;;  %v2091_v49 = vld [vmem:[%s3933_s3 + $0x140] sm:$0xff]  ;;  %v2153_v41 = vadd.f32 %v2089_v2, %v2982_v45  ;;  %v2108_v34 = vld [vmem:[%s3933_s3 + $0x1c8] sm:$0xff]  ;;  %v3965_v9 = vld [vmem:[#allocation9_spill] sm:$0xff] }
 0x1fe   : > { %2194 = vst [vmem:[%s3933_s3 + $0x78] sm:$0xff] %v2130_v16  ;;  %v2093_v16 = vld [vmem:[%s3933_s3 + $0x150] sm:$0xff]  ;;  %v2155_v45 = vadd.f32 %v2091_v49, %v3012_v62  ;;  %v2110_v10 = vld [vmem:[%s3933_s3 + $0x1d8] sm:$0xff]  ;;  %v3967_v5 = vld [vmem:[#allocation11_spill] sm:$0xff] }
 0x1ff   : > { %2195 = vst [vmem:[%s3933_s3 + $0x80] sm:$0xff] %v2131_v38  ;;  %v2095_v38 = vld [vmem:[%s3933_s3 + $0x160] sm:$0xff]  ;;  %v2157_v62 = vadd.f32 %v2093_v16, %v3042_v17  ;;  %v2112_v23 = vld [vmem:[%s3933_s3 + $0x1e8] sm:$0xff] }
 0x200   : > { %2196 = vst [vmem:[%s3933_s3 + $0x88] sm:$0xff] %v2132_v32  ;;  %v2097_v32 = vld [vmem:[%s3933_s3 + $0x170] sm:$0xff]  ;;  %v2159_v17 = vadd.f32 %v2095_v38, %v3062_v24  ;;  %v2176_v21 = vadd.f32 %v2112_v23, %v3138_v44 }
 0x201   : > { %2197 = vst [vmem:[%s3933_s3 + $0x90] sm:$0xff] %v2133_v57  ;;  %v2099_v57 = vld [vmem:[%s3933_s3 + $0x180] sm:$0xff]  ;;  %v2161_v24 = vadd.f32 %v2097_v32, %v3078_v54 }
 0x202   : > { %2198 = vst [vmem:[%s3933_s3 + $0x98] sm:$0xff] %v2134_v6  ;;  %v2101_v6 = vld [vmem:[%s3933_s3 + $0x190] sm:$0xff]  ;;  %v2163_v54 = vadd.f32 %v2099_v57, %v3086_v31 }
 0x203   : > { %2199 = vst [vmem:[%s3933_s3 + $0xa0] sm:$0xff] %v2135_v18  ;;  %v3958_v18 = vld [vmem:[#allocation2_spill] sm:$0xff] }
 0x204   : > { %2200 = vst [vmem:[%s3933_s3 + $0xa8] sm:$0xff] %v2136_v13  ;;  %v2164_v3 = vadd.f32 %v2100_v61, %v3958_v18  ;;  %v3959_v13 = vld [vmem:[#allocation3_spill] sm:$0xff] }
 0x205   : > { %2201 = vst [vmem:[%s3933_s3 + $0xb0] sm:$0xff] %v2137_v19  ;;  %v2165_v31 = vadd.f32 %v2101_v6, %v3959_v13  ;;  %v3960_v19 = vld [vmem:[#allocation4_spill] sm:$0xff] }
 0x206   : > { %2202 = vst [vmem:[%s3933_s3 + $0xb8] sm:$0xff] %v2138_v50  ;;  %v2166_v28 = vadd.f32 %v2102_v27, %v3960_v19  ;;  %v2105_v50 = vld [vmem:[%s3933_s3 + $0x1b0] sm:$0xff] }
 0x207   : > { %2203 = vst [vmem:[%s3933_s3 + $0xc0] sm:$0xff] %v2139_v0  ;;  %v2167_v0 = vadd.f32 %v2103_v52, %v3961_v26 }
 0x208   : > { %2204 = vst [vmem:[%s3933_s3 + $0xc8] sm:$0xff] %v2140_v22  ;;  %v3962_v22 = vld [vmem:[#allocation6_spill] sm:$0xff] }
 0x209   : > { %2205 = vst [vmem:[%s3933_s3 + $0xd0] sm:$0xff] %v2141_v58  ;;  %v2168_v63 = vadd.f32 %v2104_v60, %v3962_v22  ;;  %v2107_v58 = vld [vmem:[%s3933_s3 + $0x1c0] sm:$0xff] }
 0x20a   : > { %2206 = vst [vmem:[%s3933_s3 + $0xd8] sm:$0xff] %v2142_v47  ;;  %v2169_v47 = vadd.f32 %v2105_v50, %v3963_v14 }
 0x20b   : > { %2207 = vst [vmem:[%s3933_s3 + $0xe0] sm:$0xff] %v2143_v55  ;;  %v3964_v55 = vld [vmem:[#allocation8_spill] sm:$0xff] }
 0x20c   : > { %2208 = vst [vmem:[%s3933_s3 + $0xe8] sm:$0xff] %v2144_v59  ;;  %v2170_v20 = vadd.f32 %v2106_v11, %v3964_v55  ;;  %v2109_v59 = vld [vmem:[%s3933_s3 + $0x1d0] sm:$0xff] }
 0x20d   : > { %2209 = vst [vmem:[%s3933_s3 + $0xf0] sm:$0xff] %v2145_v46  ;;  %v2171_v46 = vadd.f32 %v2107_v58, %v3965_v9 }
 0x20e   : > { %2210 = vst [vmem:[%s3933_s3 + $0xf8] sm:$0xff] %v2146_v36  ;;  %v3966_v36 = vld [vmem:[#allocation10_spill] sm:$0xff] }
 0x20f   : > { %2211 = vst [vmem:[%s3933_s3 + $0x100] sm:$0xff] %v2147_v25  ;;  %v2172_v48 = vadd.f32 %v2108_v34, %v3966_v36  ;;  %v2111_v25 = vld [vmem:[%s3933_s3 + $0x1e0] sm:$0xff] }
 0x210   : > { %2212 = vst [vmem:[%s3933_s3 + $0x108] sm:$0xff] %v2148_v33  ;;  %v2173_v33 = vadd.f32 %v2109_v59, %v3967_v5  ;;  %v2175_v2 = vadd.f32 %v2111_v25, %v3134_v56 }
 0x211   : > { %2213 = vst [vmem:[%s3933_s3 + $0x110] sm:$0xff] %v2149_v39  ;;  %v3968_v39 = vld [vmem:[#allocation12_spill] sm:$0xff] }
 0x212   : > { %2214 = vst [vmem:[%s3933_s3 + $0x118] sm:$0xff] %v2150_v1  ;;  %v2174_v30 = vadd.f32 %v2110_v10, %v3968_v39  ;;  %v2113_v1 = vld [vmem:[%s3933_s3 + $0x1f0] sm:$0xff] }
 0x213   : > { %2215 = vst [vmem:[%s3933_s3 + $0x120] sm:$0xff] %v2151_v40  ;;  %v2114_v40 = vld [vmem:[%s3933_s3 + $0x1f8] sm:$0xff] }
 0x214   : > { %2216 = vst [vmem:[%s3933_s3 + $0x128] sm:$0xff] %v2152_v7  ;;  %v2177_v7 = vadd.f32 %v2113_v1, %v3142_v42  ;;  %v2178_v56 = vadd.f32 %v2114_v40, %v3144_v12 }
 0x215   : > { %2217 = vst [vmem:[%s3933_s3 + $0x130] sm:$0xff] %v2153_v41 }
 0x216   : > { %2218 = vst [vmem:[%s3933_s3 + $0x138] sm:$0xff] %v2154_v8 }
 0x217   : > { %2219 = vst [vmem:[%s3933_s3 + $0x140] sm:$0xff] %v2155_v45 }
 0x218   : > { %2220 = vst [vmem:[%s3933_s3 + $0x148] sm:$0xff] %v2156_v15 }
 0x219   : > { %2221 = vst [vmem:[%s3933_s3 + $0x150] sm:$0xff] %v2157_v62 }
 0x21a   : > { %2222 = vst [vmem:[%s3933_s3 + $0x158] sm:$0xff] %v2158_v35 }
 0x21b   : > { %2223 = vst [vmem:[%s3933_s3 + $0x160] sm:$0xff] %v2159_v17 }
 0x21c   : > { %2224 = vst [vmem:[%s3933_s3 + $0x168] sm:$0xff] %v2160_v53 }
 0x21d   : > { %2225 = vst [vmem:[%s3933_s3 + $0x170] sm:$0xff] %v2161_v24 }
 0x21e   : > { %2226 = vst [vmem:[%s3933_s3 + $0x178] sm:$0xff] %v2162_v43 }
 0x21f   : > { %2227 = vst [vmem:[%s3933_s3 + $0x180] sm:$0xff] %v2163_v54 }
 0x220   : > { %2228 = vst [vmem:[%s3933_s3 + $0x188] sm:$0xff] %v2164_v3 }
 0x221   : > { %2229 = vst [vmem:[%s3933_s3 + $0x190] sm:$0xff] %v2165_v31 }
 0x222   : > { %2230 = vst [vmem:[%s3933_s3 + $0x198] sm:$0xff] %v2166_v28 }
 0x223   : > { %2231 = vst [vmem:[%s3933_s3 + $0x1a0] sm:$0xff] %v2167_v0 }
 0x224   : > { %2232 = vst [vmem:[%s3933_s3 + $0x1a8] sm:$0xff] %v2168_v63 }
 0x225   : > { %2233 = vst [vmem:[%s3933_s3 + $0x1b0] sm:$0xff] %v2169_v47 }
 0x226   : > { %2234 = vst [vmem:[%s3933_s3 + $0x1b8] sm:$0xff] %v2170_v20 }
 0x227   : > { %2235 = vst [vmem:[%s3933_s3 + $0x1c0] sm:$0xff] %v2171_v46 }
 0x228   : > { %2236 = vst [vmem:[%s3933_s3 + $0x1c8] sm:$0xff] %v2172_v48 }
 0x229   : > { %2237 = vst [vmem:[%s3933_s3 + $0x1d0] sm:$0xff] %v2173_v33 }
 0x22a   : > { %2238 = vst [vmem:[%s3933_s3 + $0x1d8] sm:$0xff] %v2174_v30 }
 0x22b   : > { %2239 = vst [vmem:[%s3933_s3 + $0x1e0] sm:$0xff] %v2175_v2 }
 0x22c   : > { %2240 = vst [vmem:[%s3933_s3 + $0x1e8] sm:$0xff] %v2176_v21 }
 0x22d   : > { %2241 = vst [vmem:[%s3933_s3 + $0x1f0] sm:$0xff] %v2177_v7 }
 0x22e   : > { %2242 = vst [vmem:[%s3933_s3 + $0x1f8] sm:$0xff] %v2178_v56 }
 0x22f PF: > { %s13_s14 = sadd.s32 1, %s2640_s14   ;;  %s3969_s12 = smov %s2636_s13 }
 0x230   : > { %p10_p7 = scmp.ge.s32.totalorder %s13_s14, 4   ;;  %s3970_s13 = smov %s3972_s15 }
 0x232   :  { %12 = sbr.rel (!%p10_p7) target bundleno = 2 (0x2), region = 74 }

</bundles_post_ra>
